<compile_context>
chip_gen: v7x
topology: tpu7x:2x2x1
jax: 0.10.0
libtpu: 0.0.40
codegen_flags: <defaults>
</compile_context>

<pallas_src>
import jax
import jax.numpy as jnp
from jax.experimental import pallas as pl
from jax.experimental.pallas import tpu as pltpu

EPS = 1e-5
LANES = 128


def _round_up(x, m):
    return (x + m - 1) // m * m


def _vmem_capacity():
    try:
        return int(pltpu.get_tpu_info().vmem_capacity_bytes)
    except Exception:
        return 64 * 1024 * 1024          # conservative default (v7x per-TC)


def _compiler_params():
    return pltpu.CompilerParams(
        dimension_semantics=("parallel", "arbitrary"),   # batch across TCs
        vmem_limit_bytes=int(_vmem_capacity() * 3 // 4))


# ---------------------------------------------------------------------------
# kernels
# ---------------------------------------------------------------------------
def _conv_body(x_ref, sc_ref, sh_ref, w_ref, b_ref, y_ref, s_ref):
    """One H-row block of a 3x3 'same' conv (+bias).  The previous layer's
    BatchNorm+ReLU is optionally fused into the input load; per-channel
    partial BN statistics (sum, sum of squares) are emitted alongside the
    raw conv output."""
    i, nb = pl.program_id(1), pl.num_programs(1)
    H, W, Ci = x_ref.shape
    Hb, _, Co = y_ref.shape
    Kc = w_ref.shape[1]                    # per-dy contraction width (padded)
    kpad = Kc - 3 * Ci

    def load_rows(start, size):
        v = x_ref[pl.ds(start, size)].astype(jnp.float32)
        if sc_ref is not None:             # fused BN+ReLU of previous layer
            v = jnp.maximum(v * sc_ref[...] + sh_ref[...], 0.0)
        return v

    r0 = i * Hb
    xc = load_rows(r0, Hb)                              # (Hb, W, Ci)
    top = load_rows(jnp.maximum(r0 - 1, 0), 1)          # 1-row halo above
    bot = load_rows(jnp.minimum(r0 + Hb, H - 1), 1)     # 1-row halo below
    # true zero padding at the image boundary (applied AFTER BN+ReLU, as the
    # conv pads its own input with zeros)
    top = jnp.where(i > 0, top, 0.0)
    bot = jnp.where(i < nb - 1, bot, 0.0)

    if Hb > 1:
        rows = {-1: jnp.concatenate([top, xc[:Hb - 1]], axis=0),
                0: xc,
                1: jnp.concatenate([xc[1:], bot], axis=0)}
    else:
        rows = {-1: top, 0: xc, 1: bot}

    zcol = jnp.zeros((Hb, 1, Ci), jnp.float32)
    zpad = jnp.zeros((Hb, W, kpad), jnp.float32) if kpad else None

    # three accumulated MXU dots (one per kh); chunks are built in registers
    # (no 9x im2col scratch slab) and cast to bf16 only at the dot.
    acc = jnp.zeros((Hb * W, Co), jnp.float32)
    for dy, oy in enumerate((-1, 0, 1)):
        r = rows[oy]
        parts = [jnp.concatenate([zcol, r[:, :W - 1]], axis=1),   # kw=0 (x-1)
                 r,                                               # kw=1 (x  )
                 jnp.concatenate([r[:, 1:], zcol], axis=1)]       # kw=2 (x+1)
        if zpad is not None:
            parts.append(zpad)                                    # pad K->Kc
        chunk = jnp.concatenate(parts, axis=-1).reshape(Hb * W, Kc)
        acc = acc + jnp.dot(chunk.astype(jnp.bfloat16), w_ref[dy],
                            preferred_element_type=jnp.float32)
    acc = acc + b_ref[...]

    y_ref[...] = acc.reshape(Hb, W, Co).astype(y_ref.dtype)
    # partial BN statistics in f32, same pass as the conv output
    s_ref[...] = jnp.concatenate(
        [jnp.sum(acc, axis=0, keepdims=True),
         jnp.sum(acc * acc, axis=0, keepdims=True)], axis=0)


def _conv_kernel(x_ref, w_ref, b_ref, y_ref, s_ref):
    _conv_body(x_ref, None, None, w_ref, b_ref, y_ref, s_ref)


def _bn_relu_conv_kernel(x_ref, sc_ref, sh_ref, w_ref, b_ref, y_ref, s_ref):
    _conv_body(x_ref, sc_ref, sh_ref, w_ref, b_ref, y_ref, s_ref)


def _bn_relu_kernel(x_ref, sc_ref, sh_ref, o_ref):
    # elementwise math in f32 (v5e VPU has no bf16 ALUs)
    x = x_ref[...].astype(jnp.float32)
    o_ref[...] = jnp.maximum(x * sc_ref[...] + sh_ref[...], 0.0)


# ---------------------------------------------------------------------------
# pallas_call wrappers
# ---------------------------------------------------------------------------
def _conv_pass(x, w3, b, hb, scale=None, shift=None):
    """One 3x3 conv over NHWC input, row-tiled.  Returns the raw bf16 conv
    output and per-(batch, row-block) f32 (sum, sumsq) BN partials."""
    N, H, W, Ci = x.shape
    Co = w3.shape[2]
    nb = H // hb

    # input: full image per batch element, resident across the row-block axis
    # TODO(synk): for very large H*W, row-tile the input too with a manual
    # halo DMA (memory_space=pl.ANY + pltpu.make_async_copy).
    x_spec = pl.BlockSpec((None, H, W, Ci), lambda n, i: (n, 0, 0, 0))
    w_spec = pl.BlockSpec(w3.shape, lambda n, i: (0, 0, 0))
    vec = lambda c: pl.BlockSpec((1, c), lambda n, i: (0, 0))
    y_spec = pl.BlockSpec((None, hb, W, Co), lambda n, i: (n, i, 0, 0))
    s_spec = pl.BlockSpec((None, None, 2, Co), lambda n, i: (n, i, 0, 0))

    out_shape = (jax.ShapeDtypeStruct((N, H, W, Co), jnp.bfloat16),
                 jax.ShapeDtypeStruct((N, nb, 2, Co), jnp.float32))

    if scale is None:
        kernel = _conv_kernel
        in_specs = [x_spec, w_spec, vec(Co)]
        args = (x, w3, b)
    else:
        kernel = _bn_relu_conv_kernel
        in_specs = [x_spec, vec(Ci), vec(Ci), w_spec, vec(Co)]
        args = (x, scale, shift, w3, b)

    return pl.pallas_call(
        kernel,
        grid=(N, nb),
        in_specs=in_specs,
        out_specs=(y_spec, s_spec),
        out_shape=out_shape,
        compiler_params=_compiler_params(),
    )(*args)


def _bn_relu_pass(x, scale, shift, hb):
    N, H, W, C = x.shape
    nb = H // hb
    blk = pl.BlockSpec((None, hb, W, C), lambda n, i: (n, i, 0, 0))
    vec = pl.BlockSpec((1, C), lambda n, i: (0, 0))
    # TODO(synk): emit NCHW directly here (in-register transpose) to drop the
    # wrapper transpose for large activations.
    return pl.pallas_call(
        _bn_relu_kernel,
        grid=(N, nb),
        in_specs=[blk, vec, vec],
        out_specs=blk,
        out_shape=jax.ShapeDtypeStruct((N, H, W, C), jnp.float32),
        compiler_params=_compiler_params(),
    )(x, scale, shift)


# ---------------------------------------------------------------------------
# small host-side helpers
# ---------------------------------------------------------------------------
def _bn_affine(stats, gamma, beta, count):
    """Fold global batch stats and (gamma, beta) into one scale/shift FMA."""
    s = jnp.sum(stats.astype(jnp.float32), axis=(0, 1))      # (2, C)
    mean = s[0] / count
    var = jnp.maximum(s[1] / count - mean * mean, 0.0)        # biased variance
    scale = gamma.astype(jnp.float32) * jax.lax.rsqrt(var + EPS)
    shift = beta.astype(jnp.float32) - mean * scale
    return scale.reshape(1, -1), shift.reshape(1, -1)


def _pack_weight(w_oihw, k_chunk):
    """PyTorch (Co, Ci, 3, 3) -> bf16 (3, k_chunk, Co); per-kh rows ordered
    (kw, ci), zero-padded along K to k_chunk."""
    co, ci, kh, kw = w_oihw.shape
    w = jnp.transpose(w_oihw, (2, 3, 1, 0)).reshape(kh, kw * ci, co)
    w = jnp.pad(w, ((0, 0), (0, k_chunk - kw * ci), (0, 0)))
    return w.astype(jnp.bfloat16)


def _pick_row_block(H, W, c_max):
    """Largest divisor of H whose per-block footprint stays in ~1/4 of VMEM."""
    budget = _vmem_capacity() // 4
    per_row = W * c_max * (9 * 4 + 3 * 2 + 4 * 4)     # taps + chunks + outputs
    hb = max(2, min(H, budget // max(per_row, 1)))
    while H % hb:
        hb -= 1
    return max(hb, 1)


def double_conv(x_nchw, params, row_block=None):
    """NCHW in, NCHW out -- matches the nn.Module contract."""
    N, Cin, H, W = x_nchw.shape
    Cout = params["w1"].shape[0]

    # NHWC with TRUE channel counts: no 128-lane channel padding (at Cin=4 /
    # Cout=8 that padding would inflate MXU work ~32x and HBM bytes ~16x).
    x = jnp.transpose(x_nchw, (0, 2, 3, 1)).astype(jnp.float32)

    hb = row_block if row_block is not None else _pick_row_block(
        H, W, max(Cin, Cout))
    assert H % hb == 0, f"row_block {hb} must divide H {H}"

    k1 = _round_up(3 * Cin, LANES)       # per-kh contraction width, conv1
    k2 = _round_up(3 * Cout, LANES)      # per-kh contraction width, conv2
    w1 = _pack_weight(params["w1"], k1)
    w2 = _pack_weight(params["w2"], k2)
    b1 = params["b1"].astype(jnp.float32).reshape(1, -1)
    b2 = params["b2"].astype(jnp.float32).reshape(1, -1)

    count = N * H * W

    # conv1 (+bias) with fused partial BN statistics (bf16 raw activation)
    y1_raw, s1 = _conv_pass(x, w1, b1, hb)
    scale1, shift1 = _bn_affine(s1, params["g1"], params["be1"], count)

    # BN1+ReLU fused into conv2's input load; conv2 (+bias) + partial stats
    y2_raw, s2 = _conv_pass(y1_raw, w2, b2, hb, scale=scale1, shift=shift1)
    scale2, shift2 = _bn_affine(s2, params["g2"], params["be2"], count)

    # final BN2 + ReLU (row-tiled elementwise kernel), f32 output
    y2 = _bn_relu_pass(y2_raw, scale2, shift2, hb)

    return jnp.transpose(y2, (0, 3, 1, 2))


# ---------------------------------------------------------------------------
# reference + test
# ---------------------------------------------------------------------------
def reference(x, p):
    """Pure-JAX reference mirroring the PyTorch forward (training-mode BN)."""
    def conv(x, w, b):
        y = jax.lax.conv_general_dilated(
            x, w, (1, 1), "SAME", dimension_numbers=("NCHW", "OIHW", "NCHW"))
        return y + b[None, :, None, None]

    def bn(x, g, be):
        mean = x.mean(axis=(0, 2, 3), keepdims=True)
        var = ((x - mean) ** 2).mean(axis=(0, 2, 3), keepdims=True)
        return ((x - mean) * jax.lax.rsqrt(var + EPS)
                * g[None, :, None, None] + be[None, :, None, None])

    y = jax.nn.relu(bn(conv(x, p["w1"], p["b1"]), p["g1"], p["be1"]))
    y = jax.nn.relu(bn(conv(y, p["w2"], p["b2"]), p["g2"], p["be2"]))
    return y


if __name__ == "__main__":
    N, Cin, Cout, H, W = 2, 4, 8, 16, 16

    key = jax.random.PRNGKey(0)
    ks = jax.random.split(key, 9)
    params = {
        "w1": 0.1 * jax.random.normal(ks[0], (Cout, Cin, 3, 3), jnp.float32),
        "b1": 0.1 * jax.random.normal(ks[1], (Cout,), jnp.float32),
        "g1": 1.0 + 0.1 * jax.random.normal(ks[2], (Cout,), jnp.float32),
        "be1": 0.1 * jax.random.normal(ks[3], (Cout,), jnp.float32),
        "w2": 0.1 * jax.random.normal(ks[4], (Cout, Cout, 3, 3), jnp.float32),
        "b2": 0.1 * jax.random.normal(ks[5], (Cout,), jnp.float32),
        "g2": 1.0 + 0.1 * jax.random.normal(ks[6], (Cout,), jnp.float32),
        "be2": 0.1 * jax.random.normal(ks[7], (Cout,), jnp.float32),
    }
    x = jax.random.normal(ks[8], (N, Cin, H, W), jnp.float32)

    # row_block=8 -> 2 row blocks per image: exercises the halo path.
    fn = jax.jit(lambda xx, pp: double_conv(xx, pp, row_block=8))
    out = jax.block_until_ready(fn(x, params))
    ref = jax.block_until_ready(reference(x, params))

    assert out.shape == (N, Cout, H, W)
    err = jnp.max(jnp.abs(out - ref))
    # tolerance relaxed deliberately: bf16 MXU operands + bf16 inter-layer
    # activations (f32 accumulation and f32 BN statistics throughout).
    assert jnp.allclose(out, ref, atol=5e-2, rtol=5e-2), f"max abs err {err}"
    print("KERNEL_OK")
</pallas_src>

<mosaic_0001>
module attributes {stable_mosaic.version = 11 : i64} {
  func.func @_conv_kernel(%arg0: i32, %arg1: i32, %arg2: memref<1x16x16x4xf32, #tpu.memory_space<vmem>>, %arg3: memref<3x128x8xbf16, #tpu.memory_space<vmem>>, %arg4: memref<1x8xf32, #tpu.memory_space<vmem>>, %arg5: memref<1x8x16x8xbf16, #tpu.memory_space<vmem>>, %arg6: memref<1x1x2x8xf32, #tpu.memory_space<vmem>>) attributes {dimension_semantics = [#tpu.dimension_semantics<parallel>, #tpu.dimension_semantics<arbitrary>], iteration_bounds = array<i64: 2, 2>, scalar_prefetch = 0 : i64, scratch_operands = 0 : i64, tpu.core_type = #tpu.core_type<tc>, window_params = [{transform_indices = @transform_0, window_bounds = array<i64: 1, 16, 16, 4>}, {pipeline_mode = #tpu.pipeline_mode<synchronous>, transform_indices = @transform_1, window_bounds = array<i64: 3, 128, 8>}, {pipeline_mode = #tpu.pipeline_mode<synchronous>, transform_indices = @transform_2, window_bounds = array<i64: 1, 8>}, {transform_indices = @transform_3, window_bounds = array<i64: 1, 8, 16, 8>}, {transform_indices = @transform_4, window_bounds = array<i64: 1, 1, 2, 8>}]} {
    %c8_i32 = arith.constant 8 : i32
    %0 = arith.muli %arg1, %c8_i32 : i32
    %c0 = arith.constant 0 : index
    %1 = arith.index_cast %0 : i32 to index
    %c0_0 = arith.constant 0 : index
    %c0_1 = arith.constant 0 : index
    %2 = vector.load %arg2[%c0, %1, %c0_0, %c0_1] : memref<1x16x16x4xf32, #tpu.memory_space<vmem>>, vector<1x8x16x4xf32>
    %3 = vector.shape_cast %2 : vector<1x8x16x4xf32> to vector<8x16x4xf32>
    %c1_i32 = arith.constant 1 : i32
    %4 = arith.subi %0, %c1_i32 : i32
    %c0_i32 = arith.constant 0 : i32
    %5 = arith.maxsi %4, %c0_i32 : i32
    %c0_2 = arith.constant 0 : index
    %6 = arith.index_cast %5 : i32 to index
    %c0_3 = arith.constant 0 : index
    %c0_4 = arith.constant 0 : index
    %7 = vector.load %arg2[%c0_2, %6, %c0_3, %c0_4] : memref<1x16x16x4xf32, #tpu.memory_space<vmem>>, vector<1x1x16x4xf32>
    %8 = vector.shape_cast %7 : vector<1x1x16x4xf32> to vector<1x16x4xf32>
    %c8_i32_5 = arith.constant 8 : i32
    %9 = arith.addi %0, %c8_i32_5 : i32
    %c15_i32 = arith.constant 15 : i32
    %10 = arith.minsi %9, %c15_i32 : i32
    %c0_6 = arith.constant 0 : index
    %11 = arith.index_cast %10 : i32 to index
    %c0_7 = arith.constant 0 : index
    %c0_8 = arith.constant 0 : index
    %12 = vector.load %arg2[%c0_6, %11, %c0_7, %c0_8] : memref<1x16x16x4xf32, #tpu.memory_space<vmem>>, vector<1x1x16x4xf32>
    %13 = vector.shape_cast %12 : vector<1x1x16x4xf32> to vector<1x16x4xf32>
    %c0_i32_9 = arith.constant 0 : i32
    %14 = arith.cmpi sgt, %arg1, %c0_i32_9 : i32
    %cst = arith.constant 0.000000e+00 : f32
    %15 = vector.broadcast %cst : f32 to vector<1x16x4xf32>
    %16 = arith.select %14, %8, %15 : vector<1x16x4xf32>
    %c1_i32_10 = arith.constant 1 : i32
    %17 = arith.cmpi slt, %arg1, %c1_i32_10 : i32
    %cst_11 = arith.constant 0.000000e+00 : f32
    %18 = vector.broadcast %cst_11 : f32 to vector<1x16x4xf32>
    %19 = arith.select %17, %13, %18 : vector<1x16x4xf32>
    %20 = vector.extract_strided_slice %3 {offsets = [0, 0, 0], sizes = [7, 16, 4], strides = [1, 1, 1]} : vector<8x16x4xf32> to vector<7x16x4xf32>
    %21 = tpu.concatenate %16, %20 in 0 : vector<1x16x4xf32>, vector<7x16x4xf32> -> vector<8x16x4xf32>
    %22 = vector.extract_strided_slice %3 {offsets = [1, 0, 0], sizes = [7, 16, 4], strides = [1, 1, 1]} : vector<8x16x4xf32> to vector<7x16x4xf32>
    %23 = tpu.concatenate %22, %19 in 0 : vector<7x16x4xf32>, vector<1x16x4xf32> -> vector<8x16x4xf32>
    %cst_12 = arith.constant 0.000000e+00 : f32
    %24 = vector.broadcast %cst_12 : f32 to vector<8x1x4xf32>
    %cst_13 = arith.constant 0.000000e+00 : f32
    %25 = vector.broadcast %cst_13 : f32 to vector<8x16x116xf32>
    %cst_14 = arith.constant 0.000000e+00 : f32
    %26 = vector.broadcast %cst_14 : f32 to vector<128x8xf32>
    %27 = vector.extract_strided_slice %21 {offsets = [0, 0, 0], sizes = [8, 15, 4], strides = [1, 1, 1]} : vector<8x16x4xf32> to vector<8x15x4xf32>
    %28 = tpu.concatenate %24, %27 in 1 : vector<8x1x4xf32>, vector<8x15x4xf32> -> vector<8x16x4xf32>
    %29 = vector.extract_strided_slice %21 {offsets = [0, 1, 0], sizes = [8, 15, 4], strides = [1, 1, 1]} : vector<8x16x4xf32> to vector<8x15x4xf32>
    %30 = tpu.concatenate %29, %24 in 1 : vector<8x15x4xf32>, vector<8x1x4xf32> -> vector<8x16x4xf32>
    %31 = tpu.concatenate %28, %21, %30, %25 in 2 : vector<8x16x4xf32>, vector<8x16x4xf32>, vector<8x16x4xf32>, vector<8x16x116xf32> -> vector<8x16x128xf32>
    %32 = vector.shape_cast %31 : vector<8x16x128xf32> to vector<128x128xf32>
    %33 = arith.truncf %32 : vector<128x128xf32> to vector<128x128xbf16>
    %c0_15 = arith.constant 0 : index
    %c0_16 = arith.constant 0 : index
    %c0_17 = arith.constant 0 : index
    %34 = vector.load %arg3[%c0_15, %c0_16, %c0_17] : memref<3x128x8xbf16, #tpu.memory_space<vmem>>, vector<1x128x8xbf16>
    %35 = vector.shape_cast %34 : vector<1x128x8xbf16> to vector<128x8xbf16>
    %cst_18 = arith.constant dense<0.000000e+00> : vector<128x8xf32>
    %36 = tpu.matmul %33, %35, %cst_18 {dimension_numbers = #tpu.dot_dimension_numbers<[1], [0], [0], [1], [0, 0, 1, 1], [], []>} : vector<128x128xbf16>, vector<128x8xbf16>, vector<128x8xf32> -> vector<128x8xf32>
    %37 = arith.addf %26, %36 : vector<128x8xf32>
    %38 = vector.extract_strided_slice %3 {offsets = [0, 0, 0], sizes = [8, 15, 4], strides = [1, 1, 1]} : vector<8x16x4xf32> to vector<8x15x4xf32>
    %39 = tpu.concatenate %24, %38 in 1 : vector<8x1x4xf32>, vector<8x15x4xf32> -> vector<8x16x4xf32>
    %40 = vector.extract_strided_slice %3 {offsets = [0, 1, 0], sizes = [8, 15, 4], strides = [1, 1, 1]} : vector<8x16x4xf32> to vector<8x15x4xf32>
    %41 = tpu.concatenate %40, %24 in 1 : vector<8x15x4xf32>, vector<8x1x4xf32> -> vector<8x16x4xf32>
    %42 = tpu.concatenate %39, %3, %41, %25 in 2 : vector<8x16x4xf32>, vector<8x16x4xf32>, vector<8x16x4xf32>, vector<8x16x116xf32> -> vector<8x16x128xf32>
    %43 = vector.shape_cast %42 : vector<8x16x128xf32> to vector<128x128xf32>
    %44 = arith.truncf %43 : vector<128x128xf32> to vector<128x128xbf16>
    %c1 = arith.constant 1 : index
    %c0_19 = arith.constant 0 : index
    %c0_20 = arith.constant 0 : index
    %45 = vector.load %arg3[%c1, %c0_19, %c0_20] : memref<3x128x8xbf16, #tpu.memory_space<vmem>>, vector<1x128x8xbf16>
    %46 = vector.shape_cast %45 : vector<1x128x8xbf16> to vector<128x8xbf16>
    %cst_21 = arith.constant dense<0.000000e+00> : vector<128x8xf32>
    %47 = tpu.matmul %44, %46, %cst_21 {dimension_numbers = #tpu.dot_dimension_numbers<[1], [0], [0], [1], [0, 0, 1, 1], [], []>} : vector<128x128xbf16>, vector<128x8xbf16>, vector<128x8xf32> -> vector<128x8xf32>
    %48 = arith.addf %37, %47 : vector<128x8xf32>
    %49 = vector.extract_strided_slice %23 {offsets = [0, 0, 0], sizes = [8, 15, 4], strides = [1, 1, 1]} : vector<8x16x4xf32> to vector<8x15x4xf32>
    %50 = tpu.concatenate %24, %49 in 1 : vector<8x1x4xf32>, vector<8x15x4xf32> -> vector<8x16x4xf32>
    %51 = vector.extract_strided_slice %23 {offsets = [0, 1, 0], sizes = [8, 15, 4], strides = [1, 1, 1]} : vector<8x16x4xf32> to vector<8x15x4xf32>
    %52 = tpu.concatenate %51, %24 in 1 : vector<8x15x4xf32>, vector<8x1x4xf32> -> vector<8x16x4xf32>
    %53 = tpu.concatenate %50, %23, %52, %25 in 2 : vector<8x16x4xf32>, vector<8x16x4xf32>, vector<8x16x4xf32>, vector<8x16x116xf32> -> vector<8x16x128xf32>
    %54 = vector.shape_cast %53 : vector<8x16x128xf32> to vector<128x128xf32>
    %55 = arith.truncf %54 : vector<128x128xf32> to vector<128x128xbf16>
    %c2 = arith.constant 2 : index
    %c0_22 = arith.constant 0 : index
    %c0_23 = arith.constant 0 : index
    %56 = vector.load %arg3[%c2, %c0_22, %c0_23] : memref<3x128x8xbf16, #tpu.memory_space<vmem>>, vector<1x128x8xbf16>
    %57 = vector.shape_cast %56 : vector<1x128x8xbf16> to vector<128x8xbf16>
    %cst_24 = arith.constant dense<0.000000e+00> : vector<128x8xf32>
    %58 = tpu.matmul %55, %57, %cst_24 {dimension_numbers = #tpu.dot_dimension_numbers<[1], [0], [0], [1], [0, 0, 1, 1], [], []>} : vector<128x128xbf16>, vector<128x8xbf16>, vector<128x8xf32> -> vector<128x8xf32>
    %59 = arith.addf %48, %58 : vector<128x8xf32>
    %c0_25 = arith.constant 0 : index
    %c0_26 = arith.constant 0 : index
    %60 = vector.load %arg4[%c0_25, %c0_26] : memref<1x8xf32, #tpu.memory_space<vmem>>, vector<1x8xf32>
    %61 = vector.broadcast %60 : vector<1x8xf32> to vector<128x8xf32>
    %62 = arith.addf %59, %61 : vector<128x8xf32>
    %63 = vector.shape_cast %62 : vector<128x8xf32> to vector<8x16x8xf32>
    %64 = arith.truncf %63 : vector<8x16x8xf32> to vector<8x16x8xbf16>
    %c0_27 = arith.constant 0 : index
    %c0_28 = arith.constant 0 : index
    %c0_29 = arith.constant 0 : index
    %c0_30 = arith.constant 0 : index
    %65 = vector.load %arg5[%c0_27, %c0_28, %c0_29, %c0_30] : memref<1x8x16x8xbf16, #tpu.memory_space<vmem>>, vector<1x8x16x8xbf16>
    %66 = vector.shape_cast %65 : vector<1x8x16x8xbf16> to vector<8x16x8xbf16>
    %67 = vector.shape_cast %64 : vector<8x16x8xbf16> to vector<1x8x16x8xbf16>
    tpu.vector_store %arg5[%c0_27, %c0_28, %c0_29, %c0_30], %67 {strides = array<i32>} : memref<1x8x16x8xbf16, #tpu.memory_space<vmem>>, vector<1x8x16x8xbf16>,
    %cst_31 = arith.constant dense<0.000000e+00> : vector<8xf32>
    %68 = vector.multi_reduction <add>, %62, %cst_31 [0] : vector<128x8xf32> to vector<8xf32>
    %69 = vector.shape_cast %68 : vector<8xf32> to vector<1x8xf32>
    %70 = arith.mulf %62, %62 : vector<128x8xf32>
    %cst_32 = arith.constant dense<0.000000e+00> : vector<8xf32>
    %71 = vector.multi_reduction <add>, %70, %cst_32 [0] : vector<128x8xf32> to vector<8xf32>
    %72 = vector.shape_cast %71 : vector<8xf32> to vector<1x8xf32>
    %73 = tpu.concatenate %69, %72 in 0 : vector<1x8xf32>, vector<1x8xf32> -> vector<2x8xf32>
    %c0_33 = arith.constant 0 : index
    %c0_34 = arith.constant 0 : index
    %c0_35 = arith.constant 0 : index
    %c0_36 = arith.constant 0 : index
    %74 = vector.load %arg6[%c0_33, %c0_34, %c0_35, %c0_36] : memref<1x1x2x8xf32, #tpu.memory_space<vmem>>, vector<1x1x2x8xf32>
    %75 = vector.shape_cast %74 : vector<1x1x2x8xf32> to vector<2x8xf32>
    %76 = vector.shape_cast %73 : vector<2x8xf32> to vector<1x1x2x8xf32>
    tpu.vector_store %arg6[%c0_33, %c0_34, %c0_35, %c0_36], %76 {strides = array<i32>} : memref<1x1x2x8xf32, #tpu.memory_space<vmem>>, vector<1x1x2x8xf32>,
    return
  }
  func.func @transform_0(%arg0: i32, %arg1: i32) -> (i32, i32, i32, i32) {
    %c0_i32 = arith.constant 0 : i32
    %c0_i32_0 = arith.constant 0 : i32
    %c0_i32_1 = arith.constant 0 : i32
    %c0_i32_2 = arith.constant 0 : i32
    return %arg0, %c0_i32, %c0_i32_0, %c0_i32_1 : i32, i32, i32, i32
  }
  func.func @transform_1(%arg0: i32, %arg1: i32) -> (i32, i32, i32) {
    %c0_i32 = arith.constant 0 : i32
    %c0_i32_0 = arith.constant 0 : i32
    %c0_i32_1 = arith.constant 0 : i32
    %c0_i32_2 = arith.constant 0 : i32
    return %c0_i32, %c0_i32_0, %c0_i32_1 : i32, i32, i32
  }
  func.func @transform_2(%arg0: i32, %arg1: i32) -> (i32, i32) {
    %c0_i32 = arith.constant 0 : i32
    %c0_i32_0 = arith.constant 0 : i32
    %c0_i32_1 = arith.constant 0 : i32
    return %c0_i32, %c0_i32_0 : i32, i32
  }
  func.func @transform_3(%arg0: i32, %arg1: i32) -> (i32, i32, i32, i32) {
    %c0_i32 = arith.constant 0 : i32
    %c0_i32_0 = arith.constant 0 : i32
    %c0_i32_1 = arith.constant 0 : i32
    return %arg0, %arg1, %c0_i32, %c0_i32_0 : i32, i32, i32, i32
  }
  func.func @transform_4(%arg0: i32, %arg1: i32) -> (i32, i32, i32, i32) {
    %c0_i32 = arith.constant 0 : i32
    %c0_i32_0 = arith.constant 0 : i32
    %c0_i32_1 = arith.constant 0 : i32
    return %arg0, %arg1, %c0_i32, %c0_i32_0 : i32, i32, i32, i32
  }
}

module attributes {stable_mosaic.version = 11 : i64} {
  func.func @_bn_relu_conv_kernel(%arg0: i32, %arg1: i32, %arg2: memref<1x16x16x8xbf16, #tpu.memory_space<vmem>>, %arg3: memref<1x8xf32, #tpu.memory_space<vmem>>, %arg4: memref<1x8xf32, #tpu.memory_space<vmem>>, %arg5: memref<3x128x8xbf16, #tpu.memory_space<vmem>>, %arg6: memref<1x8xf32, #tpu.memory_space<vmem>>, %arg7: memref<1x8x16x8xbf16, #tpu.memory_space<vmem>>, %arg8: memref<1x1x2x8xf32, #tpu.memory_space<vmem>>) attributes {dimension_semantics = [#tpu.dimension_semantics<parallel>, #tpu.dimension_semantics<arbitrary>], iteration_bounds = array<i64: 2, 2>, scalar_prefetch = 0 : i64, scratch_operands = 0 : i64, tpu.core_type = #tpu.core_type<tc>, window_params = [{transform_indices = @transform_0, window_bounds = array<i64: 1, 16, 16, 8>}, {pipeline_mode = #tpu.pipeline_mode<synchronous>, transform_indices = @transform_1, window_bounds = array<i64: 1, 8>}, {pipeline_mode = #tpu.pipeline_mode<synchronous>, transform_indices = @transform_2, window_bounds = array<i64: 1, 8>}, {pipeline_mode = #tpu.pipeline_mode<synchronous>, transform_indices = @transform_3, window_bounds = array<i64: 3, 128, 8>}, {pipeline_mode = #tpu.pipeline_mode<synchronous>, transform_indices = @transform_4, window_bounds = array<i64: 1, 8>}, {transform_indices = @transform_5, window_bounds = array<i64: 1, 8, 16, 8>}, {transform_indices = @transform_6, window_bounds = array<i64: 1, 1, 2, 8>}]} {
    %c8_i32 = arith.constant 8 : i32
    %0 = arith.muli %arg1, %c8_i32 : i32
    %c0 = arith.constant 0 : index
    %1 = arith.index_cast %0 : i32 to index
    %c0_0 = arith.constant 0 : index
    %c0_1 = arith.constant 0 : index
    %2 = vector.load %arg2[%c0, %1, %c0_0, %c0_1] : memref<1x16x16x8xbf16, #tpu.memory_space<vmem>>, vector<1x8x16x8xbf16>
    %3 = vector.shape_cast %2 : vector<1x8x16x8xbf16> to vector<8x16x8xbf16>
    %4 = arith.extf %3 : vector<8x16x8xbf16> to vector<8x16x8xf32>
    %c0_2 = arith.constant 0 : index
    %c0_3 = arith.constant 0 : index
    %5 = vector.load %arg3[%c0_2, %c0_3] : memref<1x8xf32, #tpu.memory_space<vmem>>, vector<1x8xf32>
    %6 = vector.shape_cast %5 : vector<1x8xf32> to vector<1x1x8xf32>
    %7 = vector.broadcast %6 : vector<1x1x8xf32> to vector<8x16x8xf32>
    %8 = arith.mulf %4, %7 : vector<8x16x8xf32>
    %c0_4 = arith.constant 0 : index
    %c0_5 = arith.constant 0 : index
    %9 = vector.load %arg4[%c0_4, %c0_5] : memref<1x8xf32, #tpu.memory_space<vmem>>, vector<1x8xf32>
    %10 = vector.shape_cast %9 : vector<1x8xf32> to vector<1x1x8xf32>
    %11 = vector.broadcast %10 : vector<1x1x8xf32> to vector<8x16x8xf32>
    %12 = arith.addf %8, %11 : vector<8x16x8xf32>
    %cst = arith.constant 0.000000e+00 : f32
    %13 = vector.broadcast %cst : f32 to vector<8x16x8xf32>
    %14 = arith.maximumf %12, %13 : vector<8x16x8xf32>
    %c1_i32 = arith.constant 1 : i32
    %15 = arith.subi %0, %c1_i32 : i32
    %c0_i32 = arith.constant 0 : i32
    %16 = arith.maxsi %15, %c0_i32 : i32
    %c0_6 = arith.constant 0 : index
    %17 = arith.index_cast %16 : i32 to index
    %c0_7 = arith.constant 0 : index
    %c0_8 = arith.constant 0 : index
    %18 = vector.load %arg2[%c0_6, %17, %c0_7, %c0_8] : memref<1x16x16x8xbf16, #tpu.memory_space<vmem>>, vector<1x1x16x8xbf16>
    %19 = vector.shape_cast %18 : vector<1x1x16x8xbf16> to vector<1x16x8xbf16>
    %20 = arith.extf %19 : vector<1x16x8xbf16> to vector<1x16x8xf32>
    %c0_9 = arith.constant 0 : index
    %c0_10 = arith.constant 0 : index
    %21 = vector.load %arg3[%c0_9, %c0_10] : memref<1x8xf32, #tpu.memory_space<vmem>>, vector<1x8xf32>
    %22 = vector.shape_cast %21 : vector<1x8xf32> to vector<1x1x8xf32>
    %23 = vector.broadcast %22 : vector<1x1x8xf32> to vector<1x16x8xf32>
    %24 = arith.mulf %20, %23 : vector<1x16x8xf32>
    %c0_11 = arith.constant 0 : index
    %c0_12 = arith.constant 0 : index
    %25 = vector.load %arg4[%c0_11, %c0_12] : memref<1x8xf32, #tpu.memory_space<vmem>>, vector<1x8xf32>
    %26 = vector.shape_cast %25 : vector<1x8xf32> to vector<1x1x8xf32>
    %27 = vector.broadcast %26 : vector<1x1x8xf32> to vector<1x16x8xf32>
    %28 = arith.addf %24, %27 : vector<1x16x8xf32>
    %cst_13 = arith.constant 0.000000e+00 : f32
    %29 = vector.broadcast %cst_13 : f32 to vector<1x16x8xf32>
    %30 = arith.maximumf %28, %29 : vector<1x16x8xf32>
    %c8_i32_14 = arith.constant 8 : i32
    %31 = arith.addi %0, %c8_i32_14 : i32
    %c15_i32 = arith.constant 15 : i32
    %32 = arith.minsi %31, %c15_i32 : i32
    %c0_15 = arith.constant 0 : index
    %33 = arith.index_cast %32 : i32 to index
    %c0_16 = arith.constant 0 : index
    %c0_17 = arith.constant 0 : index
    %34 = vector.load %arg2[%c0_15, %33, %c0_16, %c0_17] : memref<1x16x16x8xbf16, #tpu.memory_space<vmem>>, vector<1x1x16x8xbf16>
    %35 = vector.shape_cast %34 : vector<1x1x16x8xbf16> to vector<1x16x8xbf16>
    %36 = arith.extf %35 : vector<1x16x8xbf16> to vector<1x16x8xf32>
    %c0_18 = arith.constant 0 : index
    %c0_19 = arith.constant 0 : index
    %37 = vector.load %arg3[%c0_18, %c0_19] : memref<1x8xf32, #tpu.memory_space<vmem>>, vector<1x8xf32>
    %38 = vector.shape_cast %37 : vector<1x8xf32> to vector<1x1x8xf32>
    %39 = vector.broadcast %38 : vector<1x1x8xf32> to vector<1x16x8xf32>
    %40 = arith.mulf %36, %39 : vector<1x16x8xf32>
    %c0_20 = arith.constant 0 : index
    %c0_21 = arith.constant 0 : index
    %41 = vector.load %arg4[%c0_20, %c0_21] : memref<1x8xf32, #tpu.memory_space<vmem>>, vector<1x8xf32>
    %42 = vector.shape_cast %41 : vector<1x8xf32> to vector<1x1x8xf32>
    %43 = vector.broadcast %42 : vector<1x1x8xf32> to vector<1x16x8xf32>
    %44 = arith.addf %40, %43 : vector<1x16x8xf32>
    %cst_22 = arith.constant 0.000000e+00 : f32
    %45 = vector.broadcast %cst_22 : f32 to vector<1x16x8xf32>
    %46 = arith.maximumf %44, %45 : vector<1x16x8xf32>
    %c0_i32_23 = arith.constant 0 : i32
    %47 = arith.cmpi sgt, %arg1, %c0_i32_23 : i32
    %cst_24 = arith.constant 0.000000e+00 : f32
    %48 = vector.broadcast %cst_24 : f32 to vector<1x16x8xf32>
    %49 = arith.select %47, %30, %48 : vector<1x16x8xf32>
    %c1_i32_25 = arith.constant 1 : i32
    %50 = arith.cmpi slt, %arg1, %c1_i32_25 : i32
    %cst_26 = arith.constant 0.000000e+00 : f32
    %51 = vector.broadcast %cst_26 : f32 to vector<1x16x8xf32>
    %52 = arith.select %50, %46, %51 : vector<1x16x8xf32>
    %53 = vector.extract_strided_slice %14 {offsets = [0, 0, 0], sizes = [7, 16, 8], strides = [1, 1, 1]} : vector<8x16x8xf32> to vector<7x16x8xf32>
    %54 = tpu.concatenate %49, %53 in 0 : vector<1x16x8xf32>, vector<7x16x8xf32> -> vector<8x16x8xf32>
    %55 = vector.extract_strided_slice %14 {offsets = [1, 0, 0], sizes = [7, 16, 8], strides = [1, 1, 1]} : vector<8x16x8xf32> to vector<7x16x8xf32>
    %56 = tpu.concatenate %55, %52 in 0 : vector<7x16x8xf32>, vector<1x16x8xf32> -> vector<8x16x8xf32>
    %cst_27 = arith.constant 0.000000e+00 : f32
    %57 = vector.broadcast %cst_27 : f32 to vector<8x1x8xf32>
    %cst_28 = arith.constant 0.000000e+00 : f32
    %58 = vector.broadcast %cst_28 : f32 to vector<8x16x104xf32>
    %cst_29 = arith.constant 0.000000e+00 : f32
    %59 = vector.broadcast %cst_29 : f32 to vector<128x8xf32>
    %60 = vector.extract_strided_slice %54 {offsets = [0, 0, 0], sizes = [8, 15, 8], strides = [1, 1, 1]} : vector<8x16x8xf32> to vector<8x15x8xf32>
    %61 = tpu.concatenate %57, %60 in 1 : vector<8x1x8xf32>, vector<8x15x8xf32> -> vector<8x16x8xf32>
    %62 = vector.extract_strided_slice %54 {offsets = [0, 1, 0], sizes = [8, 15, 8], strides = [1, 1, 1]} : vector<8x16x8xf32> to vector<8x15x8xf32>
    %63 = tpu.concatenate %62, %57 in 1 : vector<8x15x8xf32>, vector<8x1x8xf32> -> vector<8x16x8xf32>
    %64 = tpu.concatenate %61, %54, %63, %58 in 2 : vector<8x16x8xf32>, vector<8x16x8xf32>, vector<8x16x8xf32>, vector<8x16x104xf32> -> vector<8x16x128xf32>
    %65 = vector.shape_cast %64 : vector<8x16x128xf32> to vector<128x128xf32>
    %66 = arith.truncf %65 : vector<128x128xf32> to vector<128x128xbf16>
    %c0_30 = arith.constant 0 : index
    %c0_31 = arith.constant 0 : index
    %c0_32 = arith.constant 0 : index
    %67 = vector.load %arg5[%c0_30, %c0_31, %c0_32] : memref<3x128x8xbf16, #tpu.memory_space<vmem>>, vector<1x128x8xbf16>
    %68 = vector.shape_cast %67 : vector<1x128x8xbf16> to vector<128x8xbf16>
    %cst_33 = arith.constant dense<0.000000e+00> : vector<128x8xf32>
    %69 = tpu.matmul %66, %68, %cst_33 {dimension_numbers = #tpu.dot_dimension_numbers<[1], [0], [0], [1], [0, 0, 1, 1], [], []>} : vector<128x128xbf16>, vector<128x8xbf16>, vector<128x8xf32> -> vector<128x8xf32>
    %70 = arith.addf %59, %69 : vector<128x8xf32>
    %71 = vector.extract_strided_slice %14 {offsets = [0, 0, 0], sizes = [8, 15, 8], strides = [1, 1, 1]} : vector<8x16x8xf32> to vector<8x15x8xf32>
    %72 = tpu.concatenate %57, %71 in 1 : vector<8x1x8xf32>, vector<8x15x8xf32> -> vector<8x16x8xf32>
    %73 = vector.extract_strided_slice %14 {offsets = [0, 1, 0], sizes = [8, 15, 8], strides = [1, 1, 1]} : vector<8x16x8xf32> to vector<8x15x8xf32>
    %74 = tpu.concatenate %73, %57 in 1 : vector<8x15x8xf32>, vector<8x1x8xf32> -> vector<8x16x8xf32>
    %75 = tpu.concatenate %72, %14, %74, %58 in 2 : vector<8x16x8xf32>, vector<8x16x8xf32>, vector<8x16x8xf32>, vector<8x16x104xf32> -> vector<8x16x128xf32>
    %76 = vector.shape_cast %75 : vector<8x16x128xf32> to vector<128x128xf32>
    %77 = arith.truncf %76 : vector<128x128xf32> to vector<128x128xbf16>
    %c1 = arith.constant 1 : index
    %c0_34 = arith.constant 0 : index
    %c0_35 = arith.constant 0 : index
    %78 = vector.load %arg5[%c1, %c0_34, %c0_35] : memref<3x128x8xbf16, #tpu.memory_space<vmem>>, vector<1x128x8xbf16>
    %79 = vector.shape_cast %78 : vector<1x128x8xbf16> to vector<128x8xbf16>
    %cst_36 = arith.constant dense<0.000000e+00> : vector<128x8xf32>
    %80 = tpu.matmul %77, %79, %cst_36 {dimension_numbers = #tpu.dot_dimension_numbers<[1], [0], [0], [1], [0, 0, 1, 1], [], []>} : vector<128x128xbf16>, vector<128x8xbf16>, vector<128x8xf32> -> vector<128x8xf32>
    %81 = arith.addf %70, %80 : vector<128x8xf32>
    %82 = vector.extract_strided_slice %56 {offsets = [0, 0, 0], sizes = [8, 15, 8], strides = [1, 1, 1]} : vector<8x16x8xf32> to vector<8x15x8xf32>
    %83 = tpu.concatenate %57, %82 in 1 : vector<8x1x8xf32>, vector<8x15x8xf32> -> vector<8x16x8xf32>
    %84 = vector.extract_strided_slice %56 {offsets = [0, 1, 0], sizes = [8, 15, 8], strides = [1, 1, 1]} : vector<8x16x8xf32> to vector<8x15x8xf32>
    %85 = tpu.concatenate %84, %57 in 1 : vector<8x15x8xf32>, vector<8x1x8xf32> -> vector<8x16x8xf32>
    %86 = tpu.concatenate %83, %56, %85, %58 in 2 : vector<8x16x8xf32>, vector<8x16x8xf32>, vector<8x16x8xf32>, vector<8x16x104xf32> -> vector<8x16x128xf32>
    %87 = vector.shape_cast %86 : vector<8x16x128xf32> to vector<128x128xf32>
    %88 = arith.truncf %87 : vector<128x128xf32> to vector<128x128xbf16>
    %c2 = arith.constant 2 : index
    %c0_37 = arith.constant 0 : index
    %c0_38 = arith.constant 0 : index
    %89 = vector.load %arg5[%c2, %c0_37, %c0_38] : memref<3x128x8xbf16, #tpu.memory_space<vmem>>, vector<1x128x8xbf16>
    %90 = vector.shape_cast %89 : vector<1x128x8xbf16> to vector<128x8xbf16>
    %cst_39 = arith.constant dense<0.000000e+00> : vector<128x8xf32>
    %91 = tpu.matmul %88, %90, %cst_39 {dimension_numbers = #tpu.dot_dimension_numbers<[1], [0], [0], [1], [0, 0, 1, 1], [], []>} : vector<128x128xbf16>, vector<128x8xbf16>, vector<128x8xf32> -> vector<128x8xf32>
    %92 = arith.addf %81, %91 : vector<128x8xf32>
    %c0_40 = arith.constant 0 : index
    %c0_41 = arith.constant 0 : index
    %93 = vector.load %arg6[%c0_40, %c0_41] : memref<1x8xf32, #tpu.memory_space<vmem>>, vector<1x8xf32>
    %94 = vector.broadcast %93 : vector<1x8xf32> to vector<128x8xf32>
    %95 = arith.addf %92, %94 : vector<128x8xf32>
    %96 = vector.shape_cast %95 : vector<128x8xf32> to vector<8x16x8xf32>
    %97 = arith.truncf %96 : vector<8x16x8xf32> to vector<8x16x8xbf16>
    %c0_42 = arith.constant 0 : index
    %c0_43 = arith.constant 0 : index
    %c0_44 = arith.constant 0 : index
    %c0_45 = arith.constant 0 : index
    %98 = vector.load %arg7[%c0_42, %c0_43, %c0_44, %c0_45] : memref<1x8x16x8xbf16, #tpu.memory_space<vmem>>, vector<1x8x16x8xbf16>
    %99 = vector.shape_cast %98 : vector<1x8x16x8xbf16> to vector<8x16x8xbf16>
    %100 = vector.shape_cast %97 : vector<8x16x8xbf16> to vector<1x8x16x8xbf16>
    tpu.vector_store %arg7[%c0_42, %c0_43, %c0_44, %c0_45], %100 {strides = array<i32>} : memref<1x8x16x8xbf16, #tpu.memory_space<vmem>>, vector<1x8x16x8xbf16>,
    %cst_46 = arith.constant dense<0.000000e+00> : vector<8xf32>
    %101 = vector.multi_reduction <add>, %95, %cst_46 [0] : vector<128x8xf32> to vector<8xf32>
    %102 = vector.shape_cast %101 : vector<8xf32> to vector<1x8xf32>
    %103 = arith.mulf %95, %95 : vector<128x8xf32>
    %cst_47 = arith.constant dense<0.000000e+00> : vector<8xf32>
    %104 = vector.multi_reduction <add>, %103, %cst_47 [0] : vector<128x8xf32> to vector<8xf32>
    %105 = vector.shape_cast %104 : vector<8xf32> to vector<1x8xf32>
    %106 = tpu.concatenate %102, %105 in 0 : vector<1x8xf32>, vector<1x8xf32> -> vector<2x8xf32>
    %c0_48 = arith.constant 0 : index
    %c0_49 = arith.constant 0 : index
    %c0_50 = arith.constant 0 : index
    %c0_51 = arith.constant 0 : index
    %107 = vector.load %arg8[%c0_48, %c0_49, %c0_50, %c0_51] : memref<1x1x2x8xf32, #tpu.memory_space<vmem>>, vector<1x1x2x8xf32>
    %108 = vector.shape_cast %107 : vector<1x1x2x8xf32> to vector<2x8xf32>
    %109 = vector.shape_cast %106 : vector<2x8xf32> to vector<1x1x2x8xf32>
    tpu.vector_store %arg8[%c0_48, %c0_49, %c0_50, %c0_51], %109 {strides = array<i32>} : memref<1x1x2x8xf32, #tpu.memory_space<vmem>>, vector<1x1x2x8xf32>,
    return
  }
  func.func @transform_0(%arg0: i32, %arg1: i32) -> (i32, i32, i32, i32) {
    %c0_i32 = arith.constant 0 : i32
    %c0_i32_0 = arith.constant 0 : i32
    %c0_i32_1 = arith.constant 0 : i32
    %c0_i32_2 = arith.constant 0 : i32
    return %arg0, %c0_i32, %c0_i32_0, %c0_i32_1 : i32, i32, i32, i32
  }
  func.func @transform_1(%arg0: i32, %arg1: i32) -> (i32, i32) {
    %c0_i32 = arith.constant 0 : i32
    %c0_i32_0 = arith.constant 0 : i32
    %c0_i32_1 = arith.constant 0 : i32
    return %c0_i32, %c0_i32_0 : i32, i32
  }
  func.func @transform_2(%arg0: i32, %arg1: i32) -> (i32, i32) {
    %c0_i32 = arith.constant 0 : i32
    %c0_i32_0 = arith.constant 0 : i32
    %c0_i32_1 = arith.constant 0 : i32
    return %c0_i32, %c0_i32_0 : i32, i32
  }
  func.func @transform_3(%arg0: i32, %arg1: i32) -> (i32, i32, i32) {
    %c0_i32 = arith.constant 0 : i32
    %c0_i32_0 = arith.constant 0 : i32
    %c0_i32_1 = arith.constant 0 : i32
    %c0_i32_2 = arith.constant 0 : i32
    return %c0_i32, %c0_i32_0, %c0_i32_1 : i32, i32, i32
  }
  func.func @transform_4(%arg0: i32, %arg1: i32) -> (i32, i32) {
    %c0_i32 = arith.constant 0 : i32
    %c0_i32_0 = arith.constant 0 : i32
    %c0_i32_1 = arith.constant 0 : i32
    return %c0_i32, %c0_i32_0 : i32, i32
  }
  func.func @transform_5(%arg0: i32, %arg1: i32) -> (i32, i32, i32, i32) {
    %c0_i32 = arith.constant 0 : i32
    %c0_i32_0 = arith.constant 0 : i32
    %c0_i32_1 = arith.constant 0 : i32
    return %arg0, %arg1, %c0_i32, %c0_i32_0 : i32, i32, i32, i32
  }
  func.func @transform_6(%arg0: i32, %arg1: i32) -> (i32, i32, i32, i32) {
    %c0_i32 = arith.constant 0 : i32
    %c0_i32_0 = arith.constant 0 : i32
    %c0_i32_1 = arith.constant 0 : i32
    return %arg0, %arg1, %c0_i32, %c0_i32_0 : i32, i32, i32, i32
  }
}

module attributes {stable_mosaic.version = 11 : i64} {
  func.func @_bn_relu_kernel(%arg0: i32, %arg1: i32, %arg2: memref<1x8x16x8xbf16, #tpu.memory_space<vmem>>, %arg3: memref<1x8xf32, #tpu.memory_space<vmem>>, %arg4: memref<1x8xf32, #tpu.memory_space<vmem>>, %arg5: memref<1x8x16x8xf32, #tpu.memory_space<vmem>>) attributes {dimension_semantics = [#tpu.dimension_semantics<parallel>, #tpu.dimension_semantics<arbitrary>], iteration_bounds = array<i64: 2, 2>, scalar_prefetch = 0 : i64, scratch_operands = 0 : i64, tpu.core_type = #tpu.core_type<tc>, window_params = [{transform_indices = @transform_0, window_bounds = array<i64: 1, 8, 16, 8>}, {pipeline_mode = #tpu.pipeline_mode<synchronous>, transform_indices = @transform_1, window_bounds = array<i64: 1, 8>}, {pipeline_mode = #tpu.pipeline_mode<synchronous>, transform_indices = @transform_2, window_bounds = array<i64: 1, 8>}, {transform_indices = @transform_3, window_bounds = array<i64: 1, 8, 16, 8>}]} {
    %c0 = arith.constant 0 : index
    %c0_0 = arith.constant 0 : index
    %c0_1 = arith.constant 0 : index
    %c0_2 = arith.constant 0 : index
    %0 = vector.load %arg2[%c0, %c0_0, %c0_1, %c0_2] : memref<1x8x16x8xbf16, #tpu.memory_space<vmem>>, vector<1x8x16x8xbf16>
    %1 = vector.shape_cast %0 : vector<1x8x16x8xbf16> to vector<8x16x8xbf16>
    %2 = arith.extf %1 : vector<8x16x8xbf16> to vector<8x16x8xf32>
    %c0_3 = arith.constant 0 : index
    %c0_4 = arith.constant 0 : index
    %3 = vector.load %arg3[%c0_3, %c0_4] : memref<1x8xf32, #tpu.memory_space<vmem>>, vector<1x8xf32>
    %4 = vector.shape_cast %3 : vector<1x8xf32> to vector<1x1x8xf32>
    %5 = vector.broadcast %4 : vector<1x1x8xf32> to vector<8x16x8xf32>
    %6 = arith.mulf %2, %5 : vector<8x16x8xf32>
    %c0_5 = arith.constant 0 : index
    %c0_6 = arith.constant 0 : index
    %7 = vector.load %arg4[%c0_5, %c0_6] : memref<1x8xf32, #tpu.memory_space<vmem>>, vector<1x8xf32>
    %8 = vector.shape_cast %7 : vector<1x8xf32> to vector<1x1x8xf32>
    %9 = vector.broadcast %8 : vector<1x1x8xf32> to vector<8x16x8xf32>
    %10 = arith.addf %6, %9 : vector<8x16x8xf32>
    %cst = arith.constant 0.000000e+00 : f32
    %11 = vector.broadcast %cst : f32 to vector<8x16x8xf32>
    %12 = arith.maximumf %10, %11 : vector<8x16x8xf32>
    %c0_7 = arith.constant 0 : index
    %c0_8 = arith.constant 0 : index
    %c0_9 = arith.constant 0 : index
    %c0_10 = arith.constant 0 : index
    %13 = vector.load %arg5[%c0_7, %c0_8, %c0_9, %c0_10] : memref<1x8x16x8xf32, #tpu.memory_space<vmem>>, vector<1x8x16x8xf32>
    %14 = vector.shape_cast %13 : vector<1x8x16x8xf32> to vector<8x16x8xf32>
    %15 = vector.shape_cast %12 : vector<8x16x8xf32> to vector<1x8x16x8xf32>
    tpu.vector_store %arg5[%c0_7, %c0_8, %c0_9, %c0_10], %15 {strides = array<i32>} : memref<1x8x16x8xf32, #tpu.memory_space<vmem>>, vector<1x8x16x8xf32>,
    return
  }
  func.func @transform_0(%arg0: i32, %arg1: i32) -> (i32, i32, i32, i32) {
    %c0_i32 = arith.constant 0 : i32
    %c0_i32_0 = arith.constant 0 : i32
    %c0_i32_1 = arith.constant 0 : i32
    return %arg0, %arg1, %c0_i32, %c0_i32_0 : i32, i32, i32, i32
  }
  func.func @transform_1(%arg0: i32, %arg1: i32) -> (i32, i32) {
    %c0_i32 = arith.constant 0 : i32
    %c0_i32_0 = arith.constant 0 : i32
    %c0_i32_1 = arith.constant 0 : i32
    return %c0_i32, %c0_i32_0 : i32, i32
  }
  func.func @transform_2(%arg0: i32, %arg1: i32) -> (i32, i32) {
    %c0_i32 = arith.constant 0 : i32
    %c0_i32_0 = arith.constant 0 : i32
    %c0_i32_1 = arith.constant 0 : i32
    return %c0_i32, %c0_i32_0 : i32, i32
  }
  func.func @transform_3(%arg0: i32, %arg1: i32) -> (i32, i32, i32, i32) {
    %c0_i32 = arith.constant 0 : i32
    %c0_i32_0 = arith.constant 0 : i32
    %c0_i32_1 = arith.constant 0 : i32
    return %arg0, %arg1, %c0_i32, %c0_i32_0 : i32, i32, i32, i32
  }
}

</mosaic_0001>

<bundles_post_ra>
// kernel: _lambda_.5
= control target key start
LH: loop header
LB: loop body
LE: loop exit
PB: predicated region body
PF: predicated region fallthrough
CT: control target
= control target key end

     0   :  { %s581_s12 = smov 0   ;;  %s583_s13 = smov 0   ;;  %s722_s0 = inlined_call_operand.vmem [shape: bf16[2,16,16,8], index: 0, kind: input, shape index: {}]   ;;  %s723_s1 = inlined_call_operand.vmem [shape: f32[1,8], index: 1, kind: input, shape index: {}]   ;;  %s724_s2 = inlined_call_operand.vmem [shape: f32[1,8], index: 2, kind: input, shape index: {}]   ;;  %s725_s3 = inlined_call_operand.vmem [shape: f32[2,16,16,8], index: 3, kind: output, shape index: {}]  }
   0x1   :  { %s585_s14 = smov 0   ;;  %s587_s15 = smov 0  }
   0x2   :  { %s589_s16 = smov 0  }
   0x3 LB: > { %s22_s17 = sadd.s32 1, %s551_s14  ;;  %s25_s18 = sadd.s32 1, %s555_s15  ;;  %s559_s16 = sphi %s589_s16, %s13_s16   ;;  %s555_s15 = sphi %s587_s15, %s729_s15   ;;  %s551_s14 = sphi %s585_s14, %s728_s14   ;;  %s547_s13 = sphi %s583_s13, %s727_s13   ;;  %s543_s12 = sphi %s581_s12, %s726_s12  }
   0x4   : > { %p23_p0 = scmp.ge.s32.totalorder %s22_s17, 2  ;;  %p429_p1 = scmp.ge.s32.totalorder %s559_s16, 1 }
   0x5   : > { %p159_p2 = scmp.lt.s32.totalorder %s559_s16, 5 }
   0x6   : > { %s731_s17 = smov (%p23_p0, %s22_s17), 0  ;;  %s733_s18 = smov (!%p23_p0, %s25_s18), %s555_s15 }
   0x7   : > { %p160_p3 = pnand %p429_p1, %p159_p2  ;;  %p27_p4 = scmp.ge.s32.totalorder %s733_s18, 2 }
   0x8   : > { %s430_s19 = sshll.u32 (!%p160_p3), %s543_s12, 3  ;;  %p194_p5 = scmp.lt.s32.totalorder (!%p160_p3), %s547_s13, 1  ;;  %v622_v0 = vld [vmem:[%s723_s1] ss:$0 sm:$0xff] (!%p160_p3)  ;;  %vm309_vm0 = vcmask (!%p160_p3), 64512  }
   0x9   : > { %s735_s18 = smov (%p27_p4, %s733_s18), 0  ;;  %163 = sbr.rel (%p160_p3) target bundleno = 42 (0x2a), region = 32 }
   0xa   : > { %p196_p6 = scmp.lt.s32.totalorder (!%p160_p3), %s430_s19, 15  ;;  %v631_v9 = vld [vmem:[%s724_s2] ss:$0 sm:$0xff] (!%p160_p3) }
  0x10   : > { %s737_s13 = smov (!%p194_p5, %s547_s13), 1  ;;  %s739_s19 = smov (!%p196_p6, %s430_s19), 15 }
  0x11   : > { %s432_s20 = sshll.u32 %s737_s13, 5  ;;  %s431_s21 = sshll.u32 %s739_s19, 1 }
  0x12   : > { %s611_s22 = sadd.s32 %s432_s20, %s431_s21 }
  0x13   : > { %s433_s23 = sshll.u32 %s611_s22, 2  ;;  %s437_s4 = sshll.u32 %s611_s22, 3 }
  0x14   : > { %s617_s26 = scalar_lea.vmem %s722_s0, %s433_s23  ;;  %s649_s7 = scalar_lea.vmem %s725_s3, %s437_s4 }
  0x15   : > { %v443_v1 = vld [vmem:[%s617_s26] sm:$0xff]   ;;  %v474_v2 = vld [vmem:[%s617_s26 + $0x8] sm:$0xff]   ;;  %v475_v3 = vld [vmem:[%s617_s26 + $0x10] sm:$0xff]  }
  0x16   : > { %v444_v4 = vunpack.c.l.bf16 %v443_v1  ;;  %v445_v5 = vunpack.c.h.bf16 %v443_v1  ;;  %v448_v6 = vunpack.c.l.bf16 %v474_v2  ;;  %v449_v7 = vunpack.c.h.bf16 %v474_v2  ;;  %v476_v8 = vld [vmem:[%s617_s26 + $0x18] sm:$0xff]   ;;  %v477_v30 = vld [vmem:[%s617_s26 + $0x20] sm:$0xff]   ;;  %v478_v31 = vld [vmem:[%s617_s26 + $0x28] sm:$0xff]  }
  0x17   : > { %v452_v10 = vunpack.c.l.bf16 %v475_v3  ;;  %v453_v11 = vunpack.c.h.bf16 %v475_v3  ;;  %v456_v12 = vunpack.c.l.bf16 %v476_v8  ;;  %v457_v13 = vunpack.c.h.bf16 %v476_v8  ;;  %v479_v36 = vld [vmem:[%s617_s26 + $0x30] sm:$0xff]   ;;  %v480_v37 = vld [vmem:[%s617_s26 + $0x38] sm:$0xff]  }
  0x18   : > { %v254_v14 = vmul.f32 %v444_v4, %v622_v0  ;;  %v255_v15 = vmul.f32 %v445_v5, %v622_v0  ;;  %v256_v16 = vmul.f32 %v448_v6, %v622_v0  ;;  %v257_v17 = vmul.f32 %v449_v7, %v622_v0 }
  0x19   : > { %v258_v18 = vmul.f32 %v452_v10, %v622_v0  ;;  %v259_v19 = vmul.f32 %v453_v11, %v622_v0  ;;  %v260_v20 = vmul.f32 %v456_v12, %v622_v0  ;;  %v261_v21 = vmul.f32 %v457_v13, %v622_v0 }
  0x1a   : > { %v277_v22 = vadd.f32 %v631_v9, %v254_v14  ;;  %v278_v23 = vadd.f32 %v631_v9, %v255_v15  ;;  %v279_v24 = vadd.f32 %v631_v9, %v256_v16  ;;  %v280_v25 = vadd.f32 %v631_v9, %v257_v17 }
  0x1b   : > { %v281_v26 = vadd.f32 %v631_v9, %v258_v18  ;;  %v282_v27 = vadd.f32 %v631_v9, %v259_v19  ;;  %v283_v28 = vadd.f32 %v631_v9, %v260_v20  ;;  %v284_v29 = vadd.f32 %v631_v9, %v261_v21 }
  0x1c   : > { %v293_v32 = vmax.f32 %v277_v22, 0.0  ;;  %v294_v33 = vmax.f32 %v278_v23, 0.0  ;;  %v295_v34 = vmax.f32 %v279_v24, 0.0  ;;  %v296_v35 = vmax.f32 %v280_v25, 0.0 }
  0x1d   : > { %v297_v38 = vmax.f32 %v281_v26, 0.0  ;;  %v298_v39 = vmax.f32 %v282_v27, 0.0  ;;  %v299_v40 = vmax.f32 %v283_v28, 0.0  ;;  %v300_v41 = vmax.f32 %v284_v29, 0.0 }
  0x1e   : > { %310 = vst.msk [vmem:[%s649_s7] sm:$0xff] %vm309_vm0, %v293_v32  ;;  %311 = vst.msk [vmem:[%s649_s7 + $0x8] sm:$0xff] %vm309_vm0, %v294_v33  ;;  %v460_v42 = vunpack.c.l.bf16 %v477_v30  ;;  %v461_v43 = vunpack.c.h.bf16 %v477_v30  ;;  %v464_v44 = vunpack.c.l.bf16 %v478_v31  ;;  %v465_v45 = vunpack.c.h.bf16 %v478_v31 }
  0x1f   : > { %312 = vst.msk [vmem:[%s649_s7 + $0x10] sm:$0xff] %vm309_vm0, %v295_v34  ;;  %313 = vst.msk [vmem:[%s649_s7 + $0x18] sm:$0xff] %vm309_vm0, %v296_v35  ;;  %v468_v46 = vunpack.c.l.bf16 %v479_v36  ;;  %v469_v47 = vunpack.c.h.bf16 %v479_v36  ;;  %v472_v48 = vunpack.c.l.bf16 %v480_v37  ;;  %v473_v49 = vunpack.c.h.bf16 %v480_v37 }
  0x20   : > { %314 = vst.msk [vmem:[%s649_s7 + $0x20] sm:$0xff] %vm309_vm0, %v297_v38  ;;  %315 = vst.msk [vmem:[%s649_s7 + $0x28] sm:$0xff] %vm309_vm0, %v298_v39  ;;  %v262_v50 = vmul.f32 %v460_v42, %v622_v0  ;;  %v263_v51 = vmul.f32 %v461_v43, %v622_v0  ;;  %v264_v52 = vmul.f32 %v464_v44, %v622_v0 }
  0x21   : > { %316 = vst.msk [vmem:[%s649_s7 + $0x30] sm:$0xff] %vm309_vm0, %v299_v40  ;;  %317 = vst.msk [vmem:[%s649_s7 + $0x38] sm:$0xff] %vm309_vm0, %v300_v41  ;;  %v265_v53 = vmul.f32 %v465_v45, %v622_v0  ;;  %v266_v54 = vmul.f32 %v468_v46, %v622_v0  ;;  %v267_v55 = vmul.f32 %v469_v47, %v622_v0 }
  0x22   : > { %v268_v56 = vmul.f32 %v472_v48, %v622_v0  ;;  %v269_v57 = vmul.f32 %v473_v49, %v622_v0  ;;  %v285_v58 = vadd.f32 %v631_v9, %v262_v50  ;;  %v286_v59 = vadd.f32 %v631_v9, %v263_v51 }
  0x23   : > { %v287_v60 = vadd.f32 %v631_v9, %v264_v52  ;;  %v288_v61 = vadd.f32 %v631_v9, %v265_v53  ;;  %v289_v62 = vadd.f32 %v631_v9, %v266_v54  ;;  %v290_v63 = vadd.f32 %v631_v9, %v267_v55 }
  0x24   : > { %v291_v0 = vadd.f32 %v631_v9, %v268_v56  ;;  %v292_v1 = vadd.f32 %v631_v9, %v269_v57  ;;  %v301_v2 = vmax.f32 %v285_v58, 0.0  ;;  %v302_v3 = vmax.f32 %v286_v59, 0.0 }
  0x25   : > { %v303_v4 = vmax.f32 %v287_v60, 0.0  ;;  %v304_v5 = vmax.f32 %v288_v61, 0.0  ;;  %v305_v6 = vmax.f32 %v289_v62, 0.0  ;;  %v306_v7 = vmax.f32 %v290_v63, 0.0 }
  0x26   : > { %v307_v8 = vmax.f32 %v291_v0, 0.0  ;;  %v308_v10 = vmax.f32 %v292_v1, 0.0  ;;  %318 = vst.msk [vmem:[%s649_s7 + $0x40] sm:$0xff] %vm309_vm0, %v301_v2  ;;  %319 = vst.msk [vmem:[%s649_s7 + $0x48] sm:$0xff] %vm309_vm0, %v302_v3 }
  0x27   : > { %320 = vst.msk [vmem:[%s649_s7 + $0x50] sm:$0xff] %vm309_vm0, %v303_v4  ;;  %321 = vst.msk [vmem:[%s649_s7 + $0x58] sm:$0xff] %vm309_vm0, %v304_v5 }
  0x28   : > { %322 = vst.msk [vmem:[%s649_s7 + $0x60] sm:$0xff] %vm309_vm0, %v305_v6  ;;  %323 = vst.msk [vmem:[%s649_s7 + $0x68] sm:$0xff] %vm309_vm0, %v306_v7 }
  0x29   : > { %324 = vst.msk [vmem:[%s649_s7 + $0x70] sm:$0xff] %vm309_vm0, %v307_v8  ;;  %325 = vst.msk [vmem:[%s649_s7 + $0x78] sm:$0xff] %vm309_vm0, %v308_v10 }
  0x2a PF: > { %s13_s16 = sadd.s32 1, %s559_s16   ;;  %s726_s12 = smov %s551_s14 }
  0x2b   : > { %p10_p7 = scmp.ge.s32.totalorder %s13_s16, 6   ;;  %s727_s13 = smov %s555_s15 }
  0x2c   : > { %s728_s14 = smov %s731_s17  ;;  %s729_s15 = smov %s735_s18 }
  0x2d   :  { %12 = sbr.rel (!%p10_p7) target bundleno = 3 (0x3), region = 62 }

// kernel: _lambda_.3
= control target key start
LH: loop header
LB: loop body
LE: loop exit
PB: predicated region body
PF: predicated region fallthrough
CT: control target
= control target key end

     0   :  { %s2086_s15 = smov 0   ;;  %s2088_s16 = smov 0   ;;  %s2753_s0 = inlined_call_operand.vmem [shape: f32[2,16,16,4], index: 0, kind: input, shape index: {}]   ;;  %s2754_s1 = inlined_call_operand.vmem [shape: bf16[3,128,8], index: 1, kind: input, shape index: {}]   ;;  %s2755_s2 = inlined_call_operand.vmem [shape: f32[1,8], index: 2, kind: input, shape index: {}]   ;;  %s2756_s3 = inlined_call_operand.vmem [shape: bf16[2,16,16,8], index: 3, kind: output, shape index: {0}]   ;;  %s2757_s4 = inlined_call_operand.vmem [shape: f32[2,2,2,8], index: 4, kind: output, shape index: {1}]  }
   0x1   :  { %s2090_s17 = smov 0   ;;  %s2092_s18 = smov 0  }
   0x2   :  { %s2094_s19 = smov 0  }
   0x3 LB: > { %s24_s20 = sadd.s32 1, %s2049_s17  ;;  %s27_s21 = sadd.s32 1, %s2053_s18  ;;  %s2057_s19 = sphi %s2094_s19, %s15_s19   ;;  %s2053_s18 = sphi %s2092_s18, %s2764_s18   ;;  %s2049_s17 = sphi %s2090_s17, %s2763_s17   ;;  %s2045_s16 = sphi %s2088_s16, %s2762_s16   ;;  %s2041_s15 = sphi %s2086_s15, %s2761_s15  }
   0x4   : > { %p25_p0 = scmp.ge.s32.totalorder %s24_s20, 2  ;;  %p1470_p1 = scmp.ge.s32.totalorder %s2057_s19, 1 }
   0x5   : > { %p181_p2 = scmp.lt.s32.totalorder %s2057_s19, 5 }
   0x6   : > { %s2766_s20 = smov (%p25_p0, %s24_s20), 0  ;;  %s2768_s21 = smov (!%p25_p0, %s27_s21), %s2053_s18 }
   0x7   : > { %p182_p3 = pnand %p1470_p1, %p181_p2  ;;  %p29_p4 = scmp.ge.s32.totalorder %s2768_s21, 2 }
   0x8   : > { %p220_p5 = scmp.lt.s32.totalorder (!%p182_p3), %s2045_s16, 1  ;;  %s2119_s22 = sshll.u32 (!%p182_p3), %s2041_s15, 3  ;;  %v1995_v0 = vld [vmem:[%s2754_s1] sm:$0xff] (!%p182_p3)   ;;  %v1996_v1 = vld [vmem:[%s2754_s1 + $0x8] sm:$0xff] (!%p182_p3)   ;;  %v1998_v3 = vld [vmem:[%s2754_s1 + $0x10] sm:$0xff] (!%p182_p3)   ;;  %vm355_vm0 = vcmask (!%p182_p3), 1046528  }
   0x9   : > { %s2770_s21 = smov (%p29_p4, %s2768_s21), 0  ;;  %185 = sbr.rel (%p182_p3) target bundleno = 457 (0x1c9), region = 32 }
   0xa   : > { %p228_p6 = scmp.lt.s32.totalorder (!%p182_p3), %s2119_s22, 15  ;;  %1729 = vmatprep.subr.bf16.mxu0 (!%p182_p3), %v1995_v0  ;;  %v1997_v2 = vld [vmem:[%s2754_s1 + $0x40] sm:$0xff] (!%p182_p3)   ;;  %s1632_s5 = sshll.u32 (!%p182_p3), %s2041_s15, 7  ;;  %v1999_v4 = vld [vmem:[%s2754_s1 + $0x48] sm:$0xff] (!%p182_p3)   ;;  %v2001_v5 = vld [vmem:[%s2754_s1 + $0x50] sm:$0xff] (!%p182_p3)   ;;  %vm306_vm1 = vcmask (!%p182_p3), 1040384  }
   0xb   : > { %1730 = vmatpush3.bf16.msra.mxu0 (!%p182_p3), %v1995_v0  ;;  %1697 = vmatprep.subr.bf16.mxu1 (!%p182_p3), %v1997_v2  ;;  %s1481_s13 = sadd.s32 (!%p182_p3), 4294967295, %s2119_s22  ;;  %p278_p8 = scmp.gt.s32.totalorder (!%p182_p3), %s2041_s15, 0  ;;  %v2000_v6 = vld [vmem:[%s2754_s1 + $0x18] sm:$0xff] (!%p182_p3)   ;;  %v2002_v8 = vld [vmem:[%s2754_s1 + $0x20] sm:$0xff] (!%p182_p3)   ;;  %v2004_v15 = vld [vmem:[%s2754_s1 + $0x28] sm:$0xff] (!%p182_p3)   ;;  %vm500_vm2 = vcmask (!%p182_p3), 31744  }
   0xc   : > { %1731 = vmatprep.subr.bf16.mxu0 (!%p182_p3), %v1996_v1  ;;  %1698 = vmatpush3.bf16.msra.mxu1 (!%p182_p3), %v1997_v2  ;;  %p265_p7 = scmp.gt.s32.totalorder (!%p182_p3), %s1481_s13, 0  ;;  %v2003_v7 = vld [vmem:[%s2754_s1 + $0x58] sm:$0xff] (!%p182_p3)   ;;  %v2005_v11 = vld [vmem:[%s2754_s1 + $0x60] sm:$0xff] (!%p182_p3)   ;;  %p238_p9 = scmp.lt.s32.totalorder (!%p182_p3), %s2041_s15, 1  ;;  %v2006_v28 = vld [vmem:[%s2754_s1 + $0x30] sm:$0xff] (!%p182_p3)   ;;  %vm517_vm3 = vcmask (!%p182_p3), 64512  }
   0xd   : > { %1699 = vmatprep.subr.bf16.mxu1 (!%p182_p3), %v1999_v4  ;;  %s2059_s24 = smov (!%p182_p3), 4   ;;  %v2007_v33 = vld [vmem:[%s2754_s1 + $0x68] sm:$0xff] (!%p182_p3)   ;;  %s2060_s8 = smov (!%p182_p3), 8   ;;  %v2008_v38 = vld [vmem:[%s2754_s1 + $0x38] sm:$0xff] (!%p182_p3)   ;;  %v2009_v46 = vld [vmem:[%s2754_s1 + $0x70] sm:$0xff] (!%p182_p3)   ;;  %vm534_vm4 = vcmask (!%p182_p3), 97280  }
   0xe   : > { %v2265_v55 = vld [vmem:[%s2754_s1 + $0x80] sm:$0xff] (!%p182_p3)   ;;  %v2011_v58 = vld [vmem:[%s2754_s1 + $0x78] sm:$0xff] (!%p182_p3)   ;;  %vm2419_vm5 = vmpackc.low (!%p182_p3), %vm534_vm4, %vm534_vm4  ;;  %vm1213_vm6 = vcmask (!%p182_p3), 60416   ;;  %vm1321_vm7 = vcmask (!%p182_p3), 58368  }
   0xf   : > { %1732 = vmatpush3.bf16.msra.mxu0 (!%p182_p3), %v1996_v1 }
  0x10   : > { %s2772_s16 = smov (!%p220_p5, %s2045_s16), 1  ;;  %1733 = vmatprep.subr.bf16.mxu0 %v1998_v3  ;;  %s2774_s13 = smov (!%p265_p7, %s1481_s13), 0  ;;  %1700 = vmatpush3.bf16.msra.mxu1 %v1999_v4 }
  0x11   : > { %s229_s27 = scalar_select %p228_p6, %s2119_s22, 15  ;;  %1701 = vmatprep.subr.bf16.mxu1 %v2001_v5 }
  0x12   : > { %s1475_s30 = sshll.u32 %s2772_s16, 5  ;;  %s1631_s10 = sshll.u32 %s2772_s16, 8 }
  0x13   : > { %s1474_s11 = sshll.u32 %s229_s27, 1  ;;  %s2152_s26 = scalar_lea.vmem %s2753_s0, %s1631_s10  ;;  %1734 = vmatpush3.bf16.msra.mxu0 %v1998_v3 }
  0x14   : > { %s2143_s12 = sadd.s32 %s1475_s30, %s1474_s11  ;;  %s1482_s29 = sshll.u32 %s2774_s13, 4  ;;  %1735 = vmatprep.subr.bf16.mxu0 %v2000_v6  ;;  %1702 = vmatpush3.bf16.msra.mxu1 %v2001_v5 }
  0x15   : > { %s268_s7 = scalar_lea.vmem %s2152_s26, %s1482_s29  ;;  %s2166_s10 = scalar_lea.vmem %s2152_s26, %s1632_s5  ;;  %1703 = vmatprep.subr.bf16.mxu1 %v2003_v7 }
  0x16   : > { %s1984_s11 = scalar_select %p278_p8, 255, 0  ;;  %v2169_v9 = vld [vmem:[%s2166_s10] sm:$0xff]  ;;  %v2172_v10 = vld [vmem:[%s2166_s10 + $0x8] sm:$0xff]  ;;  %v2191_v20 = vld [vmem:[%s2166_s10 + $0x10] sm:$0xff] }
  0x17   : > { %1736 = vmatpush3.bf16.msra.mxu0 %v2000_v6  ;;  %v359_v13 = vrot.slane %v2169_v9, 1  ;;  %v360_v14 = vrot.slane %v2172_v10, 1  ;;  %v2194_v21 = vld [vmem:[%s2166_s10 + $0x18] sm:$0xff]  ;;  %v1888_v22 = vpack.i.bf16 %v2172_v10, %v2169_v9  ;;  %v2205_v27 = vld [vmem:[%s2166_s10 + $0x20] sm:$0xff]  ;;  %s239_s25 = scalar_select %p238_p9, %s2041_s15, 1  ;;  %v362_v30 = vrot.slane %v2191_v20, 1 }
  0x18   : > { %v2177_v12 = vld [vmem:[%s268_s7] sm:%s1984_s11]  ;;  %1737 = vmatprep.subr.bf16.mxu0 %v2002_v8  ;;  %v2184_v16 = vld [vmem:[%s268_s7 + $0x8] sm:%s1984_s11]  ;;  %1704 = vmatpush3.bf16.msra.mxu1 %v2003_v7  ;;  %v363_v32 = vrot.slane %v2194_v21, 1  ;;  %s1477_s29 = sshll.u32 %s2772_s16, 1  ;;  %v365_v35 = vrot.slane %v2205_v27, 1  ;;  %v1903_v36 = vpack.i.bf16 %v2194_v21, %v2191_v20  ;;  %v311_v39 = vrot.slane %v2172_v10, 7 }
  0x19   : > { %v356_v17 = vrot.slane %v2177_v12, 1  ;;  %v1883_v18 = vpack.i.bf16 %v2184_v16, %v2177_v12  ;;  %v357_v19 = vrot.slane %v2184_v16, 1  ;;  %1705 = vmatprep.subr.bf16.mxu1 %v2005_v11  ;;  %v361_v25 = vsel %vm355_vm0, %v359_v13, %v360_v14  ;;  %v2215_v31 = vld [vmem:[%s2166_s10 + $0x28] sm:$0xff]  ;;  %s2222_s7 = sadd.s32 %s1477_s29, %s239_s25  ;;  %v2239_v44 = vld [vmem:[%s2166_s10 + $0x30] sm:$0xff]  ;;  %v2242_v45 = vld [vmem:[%s2166_s10 + $0x38] sm:$0xff]  ;;  %s271_s11 = sadd.s32 8, %s2119_s22 }
  0x1a   : > { %v389_v26 = vsel %vm355_vm0, %v360_v14, 0.0  ;;  %v366_v37 = vrot.slane %v2215_v31, 1  ;;  %v364_v40 = vsel %vm355_vm0, %v362_v30, %v363_v32  ;;  %v390_v41 = vsel %vm355_vm0, %v363_v32, 0.0  ;;  %v2254_v50 = vld [vmem:[%s2166_s10 + $0x40] sm:$0xff]  ;;  %v2257_v51 = vld [vmem:[%s2166_s10 + $0x48] sm:$0xff]  ;;  %p2271_p10 = scmp.lt.s32.totalorder %s271_s11, 15 }
  0x1b   : > { %1738 = vmatpush3.bf16.msra.mxu0 %v2002_v8  ;;  %1884 = vrot.lane.b32.xlu0 %v1883_v18, %s2059_s24  ;;  %v358_v23 = vsel %vm355_vm0, %v356_v17, %v357_v19  ;;  %v388_v24 = vsel %vm355_vm0, %v357_v19, 0.0  ;;  %v1898_v34 = vpack.i.bf16 %v389_v26, %v361_v25  ;;  %v310_v42 = vrot.slane %v2169_v9, 7  ;;  %v2286_v2 = vld [vmem:[%s2166_s10 + $0x50] sm:$0xff]  ;;  %v259_v3 = vld [vmem:[%s2166_s10 + $0x58] sm:$0xff]  ;;  %v2296_v8 = vld [vmem:[%s2166_s10 + $0x60] sm:$0xff] }
  0x1c   : > { %1739 = vmatprep.subr.bf16.mxu0 %v2004_v15  ;;  %v1893_v29 = vpack.i.bf16 %v388_v24, %v358_v23  ;;  %1706 = vmatpush3.bf16.msra.mxu1 %v2005_v11  ;;  %v314_v43 = vrot.slane %v2194_v21, 7  ;;  %v307_v47 = vrot.slane %v2177_v12, 7  ;;  %v313_v48 = vrot.slane %v2191_v20, 7  ;;  %v261_v11 = vld [vmem:[%s2166_s10 + $0x68] sm:$0xff]  ;;  %s2776_s11 = smov (!%p2271_p10, %s271_s11), 15  ;;  %v2321_v24 = vld [vmem:[%s2166_s10 + $0x70] sm:$0xff] }
  0x1d   : > { %1707 = vmatprep.subr.bf16.mxu1 %v2007_v33  ;;  %v1908_v49 = vpack.i.bf16 %v2215_v31, %v2205_v27  ;;  %v1913_v52 = vpack.i.bf16 %v390_v41, %v364_v40  ;;  %v367_v53 = vsel %vm355_vm0, %v365_v35, %v366_v37  ;;  %v391_v54 = vsel %vm355_vm0, %v366_v37, 0.0  ;;  %v263_v25 = vld [vmem:[%s2166_s10 + $0x78] sm:$0xff]  ;;  %s1483_s22 = sshll.u32 %s2776_s11, 4 }
  0x1e   : > { %1894 = vrot.lane.b32.xlu1 %v1893_v29, %s2060_s8  ;;  %v368_v56 = vrot.slane %v2239_v44, 1  ;;  %v369_v57 = vrot.slane %v2242_v45, 1  ;;  %v308_v59 = vrot.slane %v2184_v16, 7  ;;  %v317_v60 = vrot.slane %v2215_v31, 7  ;;  %s1990_s10 = scalar_select %p238_p9, 255, 0 }
  0x1f   : > { %1740 = vmatpush3.bf16.msra.mxu0 %v2004_v15  ;;  %1889 = vrot.lane.b32.xlu0 %v1888_v22, %s2059_s24  ;;  %v316_v61 = vrot.slane %v2205_v27, 7  ;;  %v1918_v62 = vpack.i.bf16 %v391_v54, %v367_v53  ;;  %v320_v63 = vrot.slane %v2242_v45, 7  ;;  %v371_v0 = vrot.slane %v2254_v50, 1  ;;  %s275_s29 = scalar_lea.vmem %s2152_s26, %s1483_s22  ;;  %v2013_v27 = vld [vmem:[%s2754_s1 + $0x90] sm:$0xff]   ;;  %s1476_s22 = sshll.u32 %s2143_s12, 2 }
  0x20   : > { %1741 = vmatprep.subr.bf16.mxu0 %v2006_v28  ;;  %1708 = vmatpush3.bf16.msra.mxu1 %v2007_v33  ;;  %v372_v1 = vrot.slane %v2257_v51, 1  ;;  %v1923_v4 = vpack.i.bf16 %v2242_v45, %v2239_v44  ;;  %v319_v5 = vrot.slane %v2239_v44, 7  ;;  %v323_v6 = vrot.slane %v2257_v51, 7  ;;  %s2609_s15 = scalar_lea.vmem %s2756_s3, %s1476_s22  ;;  %s1478_s12 = sshll.u32 %s2222_s7, 1 }
  0x21   : > { %1709 = vmatprep.subr.bf16.mxu1 %v2009_v46  ;;  %v322_v7 = vrot.slane %v2254_v50, 7  ;;  %v370_v13 = vsel %vm355_vm0, %v368_v56, %v369_v57  ;;  %v392_v14 = vsel %vm355_vm0, %v369_v57, 0.0  ;;  %v326_v15 = vrot.slane %v259_v3, 7  ;;  %v2386_v57 = vld [vmem:[%s275_s29] sm:%s1990_s10]  ;;  %s243_s30 = scalar_lea.vmem %s2757_s4, %s1478_s12 }
  0x22   : > { %1899 = vrot.lane.b32.xlu1 %v1898_v34, %s2060_s8  ;;  %v1928_v16 = vpack.i.bf16 %v2257_v51, %v2254_v50  ;;  %v325_v17 = vrot.slane %v2286_v2, 7  ;;  %v329_v18 = vrot.slane %v261_v11, 7  ;;  %v2314_v19 = vsel %vm306_vm1, %v313_v48, %v314_v43  ;;  %v2015_v50 = vld [vmem:[%s2754_s1 + $0xa0] sm:$0xff]  }
  0x23   : > { %1742 = vmatpush3.bf16.msra.mxu0 %v2006_v28  ;;  %1904 = vrot.lane.b32.xlu0 %v1903_v36, %s2059_s24  ;;  %v373_v21 = vsel %vm355_vm0, %v371_v0, %v372_v1  ;;  %v393_v22 = vsel %vm355_vm0, %v372_v1, 0.0  ;;  %v328_v23 = vrot.slane %v2296_v8, 7  ;;  %v2327_v26 = vsel %vm306_vm1, %v307_v47, %v308_v59 }
  0x24   : > { %1743 = vmatprep.subr.bf16.mxu0 %v2008_v38  ;;  %1710 = vmatpush3.bf16.msra.mxu1 %v2009_v46  ;;  %v1933_v28 = vpack.i.bf16 %v392_v14, %v370_v13  ;;  %v374_v29 = vrot.slane %v2286_v2, 1  ;;  %v375_v30 = vrot.slane %v259_v3, 1  ;;  %v578_v31 = vrot.slane %v263_v25, 7 }
  0x25   : > { %1711 = vmatprep.subr.bf16.mxu1 %v2011_v58  ;;  %v577_v32 = vrot.slane %v2321_v24, 7  ;;  %v2336_v33 = vsel %vm306_vm1, %v316_v61, %v317_v60  ;;  %v2343_v34 = vsel %vm306_vm1, %v310_v42, %v311_v39  ;;  %v1938_v35 = vpack.i.bf16 %v393_v22, %v373_v21 }
  0x26   : > { %1909 = vrot.lane.b32.xlu1 %v1908_v49, %s2059_s24  ;;  %v2349_v36 = vsel %vm306_vm1, %v319_v5, %v320_v63  ;;  %v2354_v37 = vsel %vm306_vm1, %v322_v7, %v323_v6  ;;  %v377_v10 = vrot.slane %v2296_v8, 1  ;;  %v2361_v39 = vsel %vm306_vm1, %v325_v17, %v326_v15 }
  0x27   : > { %1744 = vmatpush3.bf16.msra.mxu0 %v2008_v38  ;;  %1914 = vrot.lane.b32.xlu0 %v1913_v52, %s2060_s8  ;;  %v378_v38 = vrot.slane %v261_v11, 1  ;;  %v2366_v40 = vsel %vm306_vm1, %v328_v23, %v329_v18  ;;  %v1943_v41 = vpack.i.bf16 %v259_v3, %v2286_v2  ;;  %v376_v43 = vsel %vm355_vm0, %v374_v29, %v375_v30 }
  0x28   : > { %1761 = vmatprep.subr.bf16.mxu0 %v2265_v55  ;;  %1712 = vmatpush3.bf16.msra.mxu1 %v2011_v58  ;;  %v394_v45 = vsel %vm355_vm0, %v375_v30, 0.0  ;;  %v2377_v46 = vsel %vm306_vm1, %v577_v32, %v578_v31  ;;  %v1948_v49 = vpack.i.bf16 %v261_v11, %v2296_v8  ;;  %v583_v51 = vrot.slane %v2321_v24, 1  ;;  %v1994_v58 = vld [vmem:[%s275_s29 + $0x8] sm:%s1990_s10]  ;;  %v2017_v8 = vld [vmem:[%s2754_s1 + $0xb0] sm:$0xff]  }
  0x29   : > { %1793 = vmatprep.subr.bf16.mxu1 %v2265_v55  ;;  %v1953_v52 = vpack.i.bf16 %v394_v45, %v376_v43  ;;  %v379_v53 = vsel %vm355_vm0, %v377_v10, %v378_v38  ;;  %v395_v54 = vsel %vm355_vm0, %v378_v38, 0.0  ;;  %v584_v56 = vrot.slane %v263_v25, 1 }
  0x2a   : > { %1919 = vrot.lane.b32.xlu1 %v1918_v62, %s2060_s8  ;;  %v1958_v59 = vpack.i.bf16 %v395_v54, %v379_v53  ;;  %v1963_v60 = vpack.i.bf16 %v263_v25, %v2321_v24  ;;  %v923_v0 = vrot.slane %v2386_v57, 1  ;;  %v924_v1 = vrot.slane %v1994_v58, 1 }
  0x2b   : > { %1924 = vrot.lane.b32.xlu0 %v1923_v4, %s2059_s24  ;;  %v585_v62 = vsel %vm355_vm0, %v583_v51, %v584_v56  ;;  %v587_v63 = vsel %vm355_vm0, %v584_v56, 0.0  ;;  %v917_v4 = vrot.slane %v2386_v57, 7  ;;  %v918_v6 = vrot.slane %v1994_v58, 7 }
  0x2c   : > { %v1968_v3 = vpack.i.bf16 %v587_v63, %v585_v62  ;;  %v1973_v11 = vpack.i.bf16 %v1994_v58, %v2386_v57  ;;  %v925_v13 = vsel %vm355_vm0, %v923_v0, %v924_v1  ;;  %v927_v14 = vsel %vm355_vm0, %v924_v1, 0.0 }
  0x2d   : > { %v1978_v15 = vpack.i.bf16 %v927_v14, %v925_v13  ;;  %v347_v21 = vsel %vm306_vm1, 0.0, %v307_v47  ;;  %v348_v38 = vsel %vm306_vm1, 0.0, %v310_v42  ;;  %v349_v54 = vsel %vm306_vm1, 0.0, %v313_v48 }
  0x2e   : > { %1929 = vrot.lane.b32.xlu1 %v1928_v16, %s2059_s24  ;;  %v2405_v16 = vsel %vm306_vm1, %v917_v4, %v918_v6  ;;  %v350_v13 = vsel %vm306_vm1, 0.0, %v316_v61 }
  0x2f   : > { %1934 = vrot.lane.b32.xlu0 %v1933_v28, %s2060_s8 }
  0x32   : > { %1939 = vrot.lane.b32.xlu1 %v1938_v35, %s2060_s8 }
  0x33   : > { %1944 = vrot.lane.b32.xlu0 %v1943_v41, %s2059_s24 }
  0x36   : > { %1949 = vrot.lane.b32.xlu1 %v1948_v49, %s2059_s24 }
  0x37   : > { %1954 = vrot.lane.b32.xlu0 %v1953_v52, %s2060_s8 }
  0x3a   : > { %1959 = vrot.lane.b32.xlu1 %v1958_v59, %s2060_s8 }
  0x3b   : > { %1964 = vrot.lane.b32.xlu0 %v1963_v60, %s2059_s24 }
  0x3e   : > { %1969 = vrot.lane.b32.xlu1 %v1968_v3, %s2060_s8 }
  0x3f   : > { %1974 = vrot.lane.b32.xlu0 %v1973_v11, %s2059_s24 }
  0x42   : > { %1979 = vrot.lane.b32.xlu1 %v1978_v15, %s2060_s8 }
  0x8d   : > { %v1885_v18 = vpop.permute.xlu0 %1884 }
  0x8e   : > { %v1887_v22 = vunpack.i.h.bf16 %v1885_v18  ;;  %v1886_v25 = vunpack.i.l.bf16 %v1885_v18 }
  0x90   : > { %v1895_v28 = vpop.permute.xlu1 %1894  ;;  %v501_v29 = vsel %vm500_vm2, %v347_v21, %v1886_v25  ;;  %v502_v30 = vsel %vm500_vm2, %v2327_v26, %v1887_v22  ;;  %v351_v25 = vsel %vm306_vm1, 0.0, %v319_v5 }
  0x91   : > { %v1897_v31 = vunpack.i.h.bf16 %v1895_v28  ;;  %v1896_v35 = vunpack.i.l.bf16 %v1895_v28  ;;  %v1890_v10 = vpop.permute.xlu0 %1889 }
  0x92   : > { %v1892_v12 = vunpack.i.h.bf16 %v1890_v10  ;;  %v1891_v41 = vunpack.i.l.bf16 %v1890_v10 }
  0x93   : > { %v518_v47 = vsel %vm517_vm3, %v501_v29, %v1896_v35  ;;  %v519_v43 = vsel %vm517_vm3, %v502_v30, %v1897_v31 }
  0x94   : > { %v1900_v26 = vpop.permute.xlu1 %1899  ;;  %v1541_v49 = vpack.c.bf16 %v519_v43, %v518_v47  ;;  %v503_v51 = vsel %vm500_vm2, %v348_v38, %v1891_v41  ;;  %v504_v52 = vsel %vm500_vm2, %v2343_v34, %v1892_v12  ;;  %v2012_v34 = vld [vmem:[%s2754_s1 + $0x88] sm:$0xff]  }
  0x95   : > { %v1902_v9 = vunpack.i.h.bf16 %v1900_v26  ;;  %v1901_v53 = vunpack.i.l.bf16 %v1900_v26  ;;  %v1905_v42 = vpop.permute.xlu0 %1904 }
  0x96   : > { %v1907_v56 = vunpack.i.h.bf16 %v1905_v42  ;;  %v1906_v58 = vunpack.i.l.bf16 %v1905_v42  ;;  %1745 = vmatprep.mubr.msk.bf16.mxu0 %vm2419_vm5, %v1541_v49 }
  0x97   : > { %v520_v59 = vsel %vm517_vm3, %v503_v51, %v1901_v53  ;;  %v521_v60 = vsel %vm517_vm3, %v504_v52, %v1902_v9 }
  0x98   : > { %v1910_v62 = vpop.permute.xlu1 %1909  ;;  %v1509_v63 = vpack.c.bf16 %v521_v60, %v520_v59  ;;  %v506_v20 = vsel %vm500_vm2, %v2314_v19, %v1907_v56  ;;  %v505_v48 = vsel %vm500_vm2, %v349_v54, %v1906_v58  ;;  %v353_v54 = vsel %vm306_vm1, 0.0, %v325_v17 }
  0x99   : > { %v1915_v0 = vpop.permute.xlu0 %1914  ;;  %v1912_v1 = vunpack.i.h.bf16 %v1910_v62  ;;  %v1911_v3 = vunpack.i.l.bf16 %v1910_v62 }
  0x9a   : > { %v1917_v6 = vunpack.i.h.bf16 %v1915_v0  ;;  %v1916_v11 = vunpack.i.l.bf16 %v1915_v0  ;;  %1713 = vmatprep.mubr.msk.bf16.mxu1 %vm2419_vm5, %v1509_v63  ;;  %1746 = vmatmul.mubr.msk.bf16.vlgmr.msra.gmra.mrb[0].mxu0 %vm2419_vm5, %v1509_v63 }
  0x9b   : > { %1762 = vmatpush3.bf16.msra.mxu0 %v2265_v55  ;;  %v508_v61 = vsel %vm500_vm2, %v2336_v33, %v1912_v1  ;;  %v507_v29 = vsel %vm500_vm2, %v350_v13, %v1911_v3  ;;  %v2014_v33 = vld [vmem:[%s2754_s1 + $0x98] sm:$0xff]  }
  0x9c   : > { %v522_v19 = vsel %vm517_vm3, %v505_v48, %v1916_v11  ;;  %v523_v14 = vsel %vm517_vm3, %v506_v20, %v1917_v6  ;;  %v1920_v15 = vpop.permute.xlu1 %1919  ;;  %1763 = vmatprep.subr.bf16.mxu0 %v2012_v34 }
  0x9d   : > { %v2449_v18 = vpack.c.bf16 %v523_v14, %v522_v19  ;;  %v1922_v21 = vunpack.i.h.bf16 %v1920_v15  ;;  %v1921_v22 = vunpack.i.l.bf16 %v1920_v15  ;;  %v1925_v28 = vpop.permute.xlu0 %1924 }
  0x9e   : > { %v1927_v30 = vunpack.i.h.bf16 %v1925_v28  ;;  %v1926_v31 = vunpack.i.l.bf16 %v1925_v28 }
  0x9f   : > { %v524_v35 = vsel %vm517_vm3, %v507_v29, %v1921_v22  ;;  %v525_v10 = vsel %vm517_vm3, %v508_v61, %v1922_v21  ;;  %1764 = vmatpush3.bf16.msra.mxu0 %v2012_v34  ;;  %1714 = vmatmul.mubr.msk.bf16.vlgmr.msra.gmra.mrb[0].mxu1 %vm2419_vm5, %v2449_v18  ;;  %v582_v22 = vsel %vm306_vm1, 0.0, %v577_v32 }
  0xa0   : > { %v2465_v44 = vpack.c.bf16 %v525_v10, %v524_v35  ;;  %1749 = vmatprep.mubr.msk.bf16.mxu0 %vm2419_vm5, %v2449_v18  ;;  %v1930_v5 = vpop.permute.xlu1 %1929  ;;  %1801 = vmatpush3.bf16.msra.mxu1 %v2265_v55  ;;  %v510_v38 = vsel %vm500_vm2, %v2349_v36, %v1927_v30  ;;  %v509_v12 = vsel %vm500_vm2, %v351_v25, %v1926_v31  ;;  %v352_v55 = vsel %vm306_vm1, 0.0, %v322_v7  ;;  %v2018_v35 = vld [vmem:[%s2754_s1 + $0xb8] sm:$0xff]  }
  0xa1   : > { %v1935_v41 = vpop.permute.xlu0 %1934  ;;  %1765 = vmatprep.subr.bf16.mxu0 %v2013_v27  ;;  %1794 = vmatprep.subr.bf16.mxu1 %v2012_v34  ;;  %v1932_v47 = vunpack.i.h.bf16 %v1930_v5  ;;  %v1931_v43 = vunpack.i.l.bf16 %v1930_v5 }
  0xa2   : > { %v1937_v26 = vunpack.i.h.bf16 %v1935_v41  ;;  %v1936_v49 = vunpack.i.l.bf16 %v1935_v41  ;;  %1717 = vmatprep.mubr.msk.bf16.mxu1 %vm2419_vm5, %v2465_v44  ;;  %1750 = vmatmul.mubr.msk.bf16.gmra.mrb[4].mxu0 %vm2419_vm5, %v2465_v44 }
  0xa3   : > { %1766 = vmatpush3.bf16.msra.mxu0 %v2013_v27  ;;  %v512_v7 = vsel %vm500_vm2, %v2354_v37, %v1932_v47  ;;  %v511_v58 = vsel %vm500_vm2, %v352_v55, %v1931_v43  ;;  %v2016_v37 = vld [vmem:[%s2754_s1 + $0xa8] sm:$0xff]  }
  0xa4   : > { %v526_v36 = vsel %vm517_vm3, %v509_v12, %v1936_v49  ;;  %v527_v51 = vsel %vm517_vm3, %v510_v38, %v1937_v26  ;;  %v1940_v52 = vpop.permute.xlu1 %1939  ;;  %1802 = vmatpush3.bf16.msra.mxu1 %v2012_v34  ;;  %1767 = vmatprep.subr.bf16.mxu0 %v2014_v33 }
  0xa5   : > { %v2488_v9 = vpack.c.bf16 %v527_v51, %v526_v36  ;;  %v1942_v53 = vunpack.i.h.bf16 %v1940_v52  ;;  %v1941_v42 = vunpack.i.l.bf16 %v1940_v52  ;;  %v1945_v56 = vpop.permute.xlu0 %1944  ;;  %1795 = vmatprep.subr.bf16.mxu1 %v2013_v27 }
  0xa6   : > { %v1947_v59 = vunpack.i.h.bf16 %v1945_v56  ;;  %v1946_v60 = vunpack.i.l.bf16 %v1945_v56 }
  0xa7   : > { %v528_v62 = vsel %vm517_vm3, %v511_v58, %v1941_v42  ;;  %v529_v63 = vsel %vm517_vm3, %v512_v7, %v1942_v53  ;;  %1768 = vmatpush3.bf16.msra.mxu0 %v2014_v33  ;;  %1718 = vmatmul.mubr.msk.bf16.gmra.mrb[4].mxu1 %vm2419_vm5, %v2488_v9 }
  0xa8   : > { %v2504_v2 = vpack.c.bf16 %v529_v63, %v528_v62  ;;  %1753 = vmatprep.mubr.msk.bf16.mxu0 %vm2419_vm5, %v2488_v9  ;;  %v1950_v17 = vpop.permute.xlu1 %1949  ;;  %1803 = vmatpush3.bf16.msra.mxu1 %v2013_v27  ;;  %v514_v34 = vsel %vm500_vm2, %v2361_v39, %v1947_v59  ;;  %v513_v20 = vsel %vm500_vm2, %v353_v54, %v1946_v60  ;;  %v354_v39 = vsel %vm306_vm1, 0.0, %v328_v23 }
  0xa9   : > { %v1955_v48 = vpop.permute.xlu0 %1954  ;;  %1769 = vmatprep.subr.bf16.mxu0 %v2015_v50  ;;  %1796 = vmatprep.subr.bf16.mxu1 %v2014_v33  ;;  %v1952_v0 = vunpack.i.h.bf16 %v1950_v17  ;;  %v1951_v1 = vunpack.i.l.bf16 %v1950_v17 }
  0xaa   : > { %v1957_v3 = vunpack.i.h.bf16 %v1955_v48  ;;  %v1956_v6 = vunpack.i.l.bf16 %v1955_v48  ;;  %1721 = vmatprep.mubr.msk.bf16.mxu1 %vm2419_vm5, %v2504_v2  ;;  %1754 = vmatmul.mubr.msk.bf16.gmra.mrb[8].mxu0 %vm2419_vm5, %v2504_v2 }
  0xab   : > { %1770 = vmatpush3.bf16.msra.mxu0 %v2015_v50  ;;  %v516_v23 = vsel %vm500_vm2, %v2366_v40, %v1952_v0  ;;  %v515_v28 = vsel %vm500_vm2, %v354_v39, %v1951_v1 }
  0xac   : > { %v530_v11 = vsel %vm517_vm3, %v513_v20, %v1956_v6  ;;  %v531_v13 = vsel %vm517_vm3, %v514_v34, %v1957_v3  ;;  %v1960_v19 = vpop.permute.xlu1 %1959  ;;  %1804 = vmatpush3.bf16.msra.mxu1 %v2014_v33  ;;  %1771 = vmatprep.subr.bf16.mxu0 %v2016_v37  ;;  %v922_v33 = vsel %vm306_vm1, 0.0, %v917_v4 }
  0xad   : > { %v1524_v14 = vpack.c.bf16 %v531_v13, %v530_v11  ;;  %v1962_v15 = vunpack.i.h.bf16 %v1960_v19  ;;  %v1961_v21 = vunpack.i.l.bf16 %v1960_v19  ;;  %1797 = vmatprep.subr.bf16.mxu1 %v2015_v50  ;;  %v1965_v25 = vpop.permute.xlu0 %1964 }
  0xae   : > { %v1967_v27 = vunpack.i.h.bf16 %v1965_v25  ;;  %v1966_v61 = vunpack.i.l.bf16 %v1965_v25 }
  0xaf   : > { %v532_v29 = vsel %vm517_vm3, %v515_v28, %v1961_v21  ;;  %v533_v30 = vsel %vm517_vm3, %v516_v23, %v1962_v15  ;;  %1772 = vmatpush3.bf16.msra.mxu0 %v2016_v37  ;;  %1722 = vmatmul.mubr.msk.bf16.gmra.mrb[8].mxu1 %vm2419_vm5, %v1524_v14  ;;  %v2600_v21 = vld [vmem:[%s2755_s2] ss:$0 sm:$0xff] }
  0xb0   : > { %v1527_v24 = vpack.c.bf16 %v533_v30, %v532_v29  ;;  %1757 = vmatprep.mubr.msk.bf16.mxu0 %vm2419_vm5, %v1524_v14  ;;  %v602_v32 = vsel %vm500_vm2, %v2377_v46, %v1967_v27  ;;  %v601_v40 = vsel %vm500_vm2, %v582_v22, %v1966_v61  ;;  %1805 = vmatpush3.bf16.msra.mxu1 %v2015_v50  ;;  %v1970_v31 = vpop.permute.xlu1 %1969 }
  0xb1   : > { %v1972_v10 = vunpack.i.h.bf16 %v1970_v31  ;;  %v1971_v5 = vunpack.i.l.bf16 %v1970_v31  ;;  %1773 = vmatprep.subr.bf16.mxu0 %v2017_v8  ;;  %1798 = vmatprep.subr.bf16.mxu1 %v2016_v37  ;;  %v1975_v38 = vpop.permute.xlu0 %1974 }
  0xb2   : > { %1725 = vmatprep.mubr.msk.bf16.mxu1 %vm2419_vm5, %v1527_v24  ;;  %1758 = vmatmul.mubr.msk.bf16.gmra.mrb[12].mxu0 %vm2419_vm5, %v1527_v24  ;;  %v1977_v46 = vunpack.i.h.bf16 %v1975_v38  ;;  %v1976_v12 = vunpack.i.l.bf16 %v1975_v38 }
  0xb3   : > { %v604_v41 = vsel %vm517_vm3, %v602_v32, %v1972_v10  ;;  %v603_v47 = vsel %vm517_vm3, %v601_v40, %v1971_v5  ;;  %1774 = vmatpush3.bf16.msra.mxu0 %v2017_v8  ;;  %1777 = vmatprep.mubr.msk.bf16.mxu0 %vm2419_vm5, %v2449_v18 }
  0xb4   : > { %v1530_v57 = vpack.c.bf16 %v604_v41, %v603_v47  ;;  %1806 = vmatpush3.bf16.msra.mxu1 %v2016_v37  ;;  %1775 = vmatprep.subr.bf16.mxu0 %v2018_v35  ;;  %v942_v4 = vsel %vm500_vm2, %v2405_v16, %v1977_v46  ;;  %v941_v43 = vsel %vm500_vm2, %v922_v33, %v1976_v12  ;;  %v1980_v26 = vpop.permute.xlu1 %1979 }
  0xb5   : > { %1799 = vmatprep.subr.bf16.mxu1 %v2017_v8  ;;  %v1982_v49 = vunpack.i.h.bf16 %v1980_v26  ;;  %v1981_v55 = vunpack.i.l.bf16 %v1980_v26 }
  0xb7   : > { %1776 = vmatpush3.bf16.msra.mxu0 %v2018_v35  ;;  %1726 = vmatmul.mubr.msk.bf16.gmra.mrb[12].mxu1 %vm2419_vm5, %v1530_v57  ;;  %v944_v36 = vsel %vm517_vm3, %v942_v4, %v1982_v49  ;;  %v943_v18 = vsel %vm517_vm3, %v941_v43, %v1981_v55 }
  0xb8   : > { %1807 = vmatpush3.bf16.msra.mxu1 %v2017_v8  ;;  %1785 = vmatprep.mubr.msk.bf16.mxu1 %vm2419_vm5, %v1524_v14  ;;  %v1610_v51 = vpack.c.bf16 %v944_v36, %v943_v18 }
  0xb9   : > { %1800 = vmatprep.subr.bf16.mxu1 %v2018_v35 }
  0xba   : > { %1778 = vmatmul.mubr.msk.bf16.vlgmr.msra.gmra.mrb[0].mxu0 %vm2419_vm5, %v2465_v44 }
  0xbb   : > { %1781 = vmatprep.mubr.msk.bf16.mxu0 %vm2419_vm5, %v2488_v9 }
  0xbc   : > { %1808 = vmatpush3.bf16.msra.mxu1 %v2018_v35 }
  0xbf   : > { %1786 = vmatmul.mubr.msk.bf16.vlgmr.msra.gmra.mrb[16].mxu1 %vm2419_vm5, %v1527_v24 }
  0xc0   : > { %1789 = vmatprep.mubr.msk.bf16.mxu1 %vm2419_vm5, %v1530_v57 }
  0xc2   : > { %1782 = vmatmul.mubr.msk.bf16.gmra.mrb[4].mxu0 %vm2419_vm5, %v2504_v2 }
  0xc7   : > { %1790 = vmatmul.mubr.msk.bf16.gmra.mrb[20].mxu1 %vm2419_vm5, %v1610_v51 }
 0x172   : > { %v1715_v16 = vpop.f32.mrb[0].mxu1 }
 0x173   : > { %v707_v44 = vpop.f32.mrb[1].mxu1 }
 0x174   : > { %v1716_v52 = vpop.f32.mrb[2].mxu1 }
 0x175   : > { %v710_v53 = vpop.f32.mrb[3].mxu1 }
 0x17a   : > { %v2583_v42 = vpop.f32.mrb[4].mxu1 }
 0x17b   : > { %v2585_v9 = vpop.f32.mrb[5].mxu1 }
 0x17c   : > { %v2587_v54 = vpop.f32.mrb[6].mxu1 }
 0x17d   : > { %v2589_v56 = vpop.f32.mrb[7].mxu1  ;;  %v1755_v50 = vpop.f32.mrb[8].mxu0 }
 0x17e   : > { %v884_v7 = vpop.f32.mrb[9].mxu0 }
 0x17f   : > { %v1756_v58 = vpop.f32.mrb[10].mxu0 }
 0x180   : > { %v887_v59 = vpop.f32.mrb[11].mxu0 }
 0x182   : > { %v1723_v60 = vpop.f32.mrb[8].mxu1 }
 0x183   : > { %v893_v62 = vadd.f32 %v1755_v50, %v1723_v60  ;;  %v739_v45 = vpop.f32.mrb[9].mxu1 }
 0x184   : > { %v885_v63 = vadd.f32 %v884_v7, %v739_v45  ;;  %v1724_v2 = vpop.f32.mrb[10].mxu1 }
 0x185   : > { %v896_v17 = vadd.f32 %v1756_v58, %v1724_v2  ;;  %v742_v37 = vpop.f32.mrb[11].mxu1  ;;  %v1759_v34 = vpop.f32.mrb[12].mxu0 }
 0x186   : > { %v888_v20 = vadd.f32 %v887_v59, %v742_v37  ;;  %v900_v48 = vpop.f32.mrb[13].mxu0 }
 0x187   : > { %v1760_v0 = vpop.f32.mrb[14].mxu0 }
 0x188   : > { %v903_v1 = vpop.f32.mrb[15].mxu0 }
 0x18a   : > { %v1727_v3 = vpop.f32.mrb[12].mxu1 }
 0x18b   : > { %v2591_v6 = vadd.f32 %v1759_v34, %v1727_v3  ;;  %v755_v39 = vpop.f32.mrb[13].mxu1 }
 0x18c   : > { %v2593_v11 = vadd.f32 %v900_v48, %v755_v39  ;;  %v1728_v13 = vpop.f32.mrb[14].mxu1 }
 0x18d   : > { %v2595_v19 = vadd.f32 %v1760_v0, %v1728_v13  ;;  %v758_v14 = vpop.f32.mrb[15].mxu1  ;;  %v1779_v15 = vpop.f32.mrb[0].mxu0 }
 0x18e   : > { %v2603_v22 = vadd.f32 %v903_v1, %v758_v14  ;;  %v1809_v25 = vadd.f32 %v1779_v15, %v1715_v16  ;;  %v1047_v8 = vpop.f32.mrb[1].mxu0 }
 0x18f   : > { %v1810_v23 = vadd.f32 %v1047_v8, %v707_v44  ;;  %v1780_v28 = vpop.f32.mrb[2].mxu0 }
 0x190   : > { %v1135_v27 = vadd.f32 %v1809_v25, %v2600_v21  ;;  %v1811_v61 = vadd.f32 %v1780_v28, %v1716_v52  ;;  %v1050_v29 = vpop.f32.mrb[3].mxu0 }
 0x191   : > { %v1133_v30 = vadd.f32 %v1810_v23, %v2600_v21  ;;  %v1812_v24 = vadd.f32 %v1050_v29, %v710_v53 }
 0x192   : > { %v1635_v32 = vpack.c.bf16 %v1135_v27, %v1135_v27  ;;  %v1269_v40 = vmul.f32 %v1135_v27, %v1135_v27  ;;  %v1136_v31 = vadd.f32 %v1811_v61, %v2600_v21  ;;  %v1787_v35 = vpop.f32.mrb[16].mxu1  ;;  %v1233_v46 = vsel %vm517_vm3, %v1135_v27, 0.0 }
 0x193   : > { %v1633_v10 = vpack.c.bf16 %v1133_v30, %v1133_v30  ;;  %v1267_v5 = vmul.f32 %v1133_v30, %v1133_v30  ;;  %v1134_v33 = vadd.f32 %v1812_v24, %v2600_v21  ;;  %v1079_v38 = vpop.f32.mrb[17].mxu1  ;;  %v1230_v12 = vsel %vm517_vm3, %v1133_v30, 0.0 }
 0x194   : > { %1216 = vst.msk [vmem:[%s2609_s15 + $0x8] sm:$0xf] %vm1213_vm6, %v1635_v32  ;;  %v1636_v41 = vpack.c.bf16 %v1136_v31, %v1136_v31  ;;  %v1788_v47 = vpop.f32.mrb[18].mxu1  ;;  %v1286_v57 = vsel %vm517_vm3, %v1269_v40, 0.0  ;;  %v1120_v51 = vadd.f32 %v1787_v35, %v893_v62  ;;  %v1118_v16 = vadd.f32 %v1079_v38, %v885_v63 }
 0x195   : > { %1214 = vst.msk [vmem:[%s2609_s15] sm:$0xf] %vm1213_vm6, %v1633_v10  ;;  %v1634_v4 = vpack.c.bf16 %v1134_v33, %v1134_v33  ;;  %v1231_v43 = vsel %vm517_vm3, %v1134_v33, 0.0  ;;  %v1268_v26 = vmul.f32 %v1134_v33, %v1134_v33  ;;  %v1783_v49 = vpop.f32.mrb[4].mxu0  ;;  %v1082_v55 = vpop.f32.mrb[19].mxu1  ;;  %v1283_v36 = vsel %vm517_vm3, %v1267_v5, 0.0 }
 0x196   : > { %1217 = vst.msk [vmem:[%s2609_s15 + $0xc] sm:$0xf] %vm1213_vm6, %v1636_v41  ;;  %v1232_v18 = vadd.f32 %v1231_v43, %v1230_v12  ;;  %v1063_v44 = vpop.f32.mrb[5].mxu0  ;;  %v1121_v53 = vadd.f32 %v1788_v47, %v896_v17  ;;  %v1813_v50 = vadd.f32 %v1783_v49, %v2583_v42  ;;  %v1119_v7 = vadd.f32 %v1082_v55, %v888_v20 }
 0x197   : > { %1215 = vst.msk [vmem:[%s2609_s15 + $0x4] sm:$0xf] %vm1213_vm6, %v1634_v4  ;;  %v1284_v52 = vsel %vm517_vm3, %v1268_v26, 0.0  ;;  %v1784_v58 = vpop.f32.mrb[6].mxu0  ;;  %v2630_v45 = vadd.f32 %v2600_v21, %v1120_v51  ;;  %v2633_v2 = vadd.f32 %v2600_v21, %v1118_v16  ;;  %v1814_v37 = vadd.f32 %v1063_v44, %v2585_v9 }
 0x198   : > { %v1234_v59 = vadd.f32 %v1233_v46, %v1232_v18  ;;  %v1285_v60 = vadd.f32 %v1284_v52, %v1283_v36  ;;  %v1066_v62 = vpop.f32.mrb[7].mxu0  ;;  %v2636_v63 = vadd.f32 %v2600_v21, %v1121_v53  ;;  %v1139_v17 = vadd.f32 %v1813_v50, %v2600_v21 }
 0x199   : > { %v2640_v42 = vadd.f32 %v2600_v21, %v1119_v7  ;;  %v1270_v34 = vmul.f32 %v1136_v31, %v1136_v31  ;;  %v1643_v48 = vpack.c.bf16 %v2630_v45, %v2630_v45  ;;  %v1641_v1 = vpack.c.bf16 %v2633_v2, %v2633_v2 }
 0x19a   : > { %v1287_v20 = vadd.f32 %v1286_v57, %v1285_v60  ;;  %v1791_v0 = vpop.f32.mrb[20].mxu1  ;;  %v1644_v3 = vpack.c.bf16 %v2636_v63, %v2636_v63  ;;  %v1639_v13 = vpack.c.bf16 %v1139_v17, %v1139_v17  ;;  %v1235_v25 = vsel %vm517_vm3, %v1136_v31, 0.0 }
 0x19b   : > { %v1095_v39 = vpop.f32.mrb[21].mxu1  ;;  %1224 = vst.msk [vmem:[%s2609_s15 + $0x28] sm:$0xf] %vm1213_vm6, %v1643_v48  ;;  %1222 = vst.msk [vmem:[%s2609_s15 + $0x20] sm:$0xf] %vm1213_vm6, %v1641_v1  ;;  %v1642_v9 = vpack.c.bf16 %v2640_v42, %v2640_v42  ;;  %v1288_v8 = vsel %vm517_vm3, %v1270_v34, 0.0  ;;  %v1137_v23 = vadd.f32 %v1814_v37, %v2600_v21  ;;  %v1236_v28 = vadd.f32 %v1235_v25, %v1234_v59 }
 0x19c   : > { %v1792_v14 = vpop.f32.mrb[22].mxu1  ;;  %1225 = vst.msk [vmem:[%s2609_s15 + $0x2c] sm:$0xf] %vm1213_vm6, %v1644_v3  ;;  %1220 = vst.msk [vmem:[%s2609_s15 + $0x18] sm:$0xf] %vm1213_vm6, %v1639_v13  ;;  %v1289_v27 = vadd.f32 %v1288_v8, %v1287_v20  ;;  %v1815_v61 = vadd.f32 %v1784_v58, %v2587_v54  ;;  %v1816_v31 = vadd.f32 %v1066_v62, %v2589_v56  ;;  %v1241_v49 = vsel %vm517_vm3, %v1139_v17, 0.0 }
 0x19d   : > { %v1098_v15 = vpop.f32.mrb[23].mxu1  ;;  %1223 = vst.msk [vmem:[%s2609_s15 + $0x24] sm:$0xf] %vm1213_vm6, %v1642_v9  ;;  %v1637_v29 = vpack.c.bf16 %v1137_v23, %v1137_v23  ;;  %v1237_v30 = vsel %vm517_vm3, %v1137_v23, 0.0  ;;  %v1271_v24 = vmul.f32 %v1137_v23, %v1137_v23  ;;  %v1124_v35 = vadd.f32 %v1791_v0, %v2591_v6 }
 0x19e   : > { %v1238_v32 = vadd.f32 %v1237_v30, %v1236_v28  ;;  %v1140_v40 = vadd.f32 %v1815_v61, %v2600_v21  ;;  %v1122_v5 = vadd.f32 %v1095_v39, %v2593_v11  ;;  %v1125_v54 = vadd.f32 %v1792_v14, %v2595_v19 }
 0x19f   : > { %1218 = vst.msk [vmem:[%s2609_s15 + $0x10] sm:$0xf] %vm1213_vm6, %v1637_v29  ;;  %v1290_v10 = vsel %vm517_vm3, %v1271_v24, 0.0  ;;  %v1123_v33 = vadd.f32 %v1098_v15, %v2603_v22  ;;  %v1138_v12 = vadd.f32 %v1816_v31, %v2600_v21  ;;  %v1147_v41 = vadd.f32 %v2600_v21, %v1124_v35 }
 0x1a0   : > { %v1291_v38 = vadd.f32 %v1290_v10, %v1289_v27  ;;  %v1640_v46 = vpack.c.bf16 %v1140_v40, %v1140_v40  ;;  %v1145_v56 = vadd.f32 %v2600_v21, %v1122_v5  ;;  %v2679_v6 = vadd.f32 %v2600_v21, %v1125_v54 }
 0x1a1   : > { %v1273_v47 = vmul.f32 %v1139_v17, %v1139_v17  ;;  %v1146_v11 = vadd.f32 %v2600_v21, %v1123_v33  ;;  %v1638_v19 = vpack.c.bf16 %v1138_v12, %v1138_v12  ;;  %v1239_v22 = vsel %vm517_vm3, %v1138_v12, 0.0 }
 0x1a2   : > { %1221 = vst.msk [vmem:[%s2609_s15 + $0x1c] sm:$0xf] %vm1213_vm6, %v1640_v46  ;;  %v1272_v57 = vmul.f32 %v1138_v12, %v1138_v12  ;;  %v1647_v4 = vpack.c.bf16 %v1147_v41, %v1147_v41  ;;  %v1240_v43 = vadd.f32 %v1239_v22, %v1238_v32  ;;  %v1645_v26 = vpack.c.bf16 %v1145_v56, %v1145_v56 }
 0x1a3   : > { %v1274_v55 = vmul.f32 %v1140_v40, %v1140_v40  ;;  %1219 = vst.msk [vmem:[%s2609_s15 + $0x14] sm:$0xf] %vm1213_vm6, %v1638_v19  ;;  %v1648_v21 = vpack.c.bf16 %v2679_v6, %v2679_v6  ;;  %v1275_v16 = vmul.f32 %v2633_v2, %v2633_v2  ;;  %v1294_v44 = vsel %vm517_vm3, %v1273_v47, 0.0 }
 0x1a4   : > { %v1292_v36 = vsel %vm517_vm3, %v1272_v57, 0.0  ;;  %1228 = vst.msk [vmem:[%s2609_s15 + $0x38] sm:$0xf] %vm1213_vm6, %v1647_v4  ;;  %v1242_v18 = vadd.f32 %v1241_v49, %v1240_v43  ;;  %1226 = vst.msk [vmem:[%s2609_s15 + $0x30] sm:$0xf] %vm1213_vm6, %v1645_v26  ;;  %v1243_v52 = vsel %vm517_vm3, %v1140_v40, 0.0  ;;  %v1646_v53 = vpack.c.bf16 %v1146_v11, %v1146_v11 }
 0x1a5   : > { %v1293_v51 = vadd.f32 %v1292_v36, %v1291_v38  ;;  %1229 = vst.msk [vmem:[%s2609_s15 + $0x3c] sm:$0xf] %vm1213_vm6, %v1648_v21  ;;  %v1245_v58 = vsel %vm517_vm3, %v2633_v2, 0.0  ;;  %v1276_v59 = vmul.f32 %v2640_v42, %v2640_v42  ;;  %v1296_v60 = vsel %vm517_vm3, %v1274_v55, 0.0 }
 0x1a6   : > { %v1244_v50 = vadd.f32 %v1243_v52, %v1242_v18  ;;  %1227 = vst.msk [vmem:[%s2609_s15 + $0x34] sm:$0xf] %vm1213_vm6, %v1646_v53  ;;  %v1277_v37 = vmul.f32 %v2630_v45, %v2630_v45  ;;  %v1298_v34 = vsel %vm517_vm3, %v1275_v16, 0.0  ;;  %v1247_v20 = vsel %vm517_vm3, %v2640_v42, 0.0 }
 0x1a7   : > { %v1295_v7 = vadd.f32 %v1294_v44, %v1293_v51  ;;  %v1249_v2 = vsel %vm517_vm3, %v2630_v45, 0.0  ;;  %v1278_v1 = vmul.f32 %v2636_v63, %v2636_v63  ;;  %v1300_v3 = vsel %vm517_vm3, %v1276_v59, 0.0 }
 0x1a8   : > { %v1246_v62 = vadd.f32 %v1245_v58, %v1244_v50  ;;  %v1302_v14 = vsel %vm517_vm3, %v1277_v37, 0.0  ;;  %v1251_v9 = vsel %vm517_vm3, %v2636_v63, 0.0  ;;  %v1279_v15 = vmul.f32 %v1145_v56, %v1145_v56 }
 0x1a9   : > { %v1297_v17 = vadd.f32 %v1296_v60, %v1295_v7  ;;  %v1304_v8 = vsel %vm517_vm3, %v1278_v1, 0.0  ;;  %v1253_v23 = vsel %vm517_vm3, %v1145_v56, 0.0  ;;  %v1280_v45 = vmul.f32 %v1146_v11, %v1146_v11 }
 0x1aa   : > { %v1248_v0 = vadd.f32 %v1247_v20, %v1246_v62  ;;  %v1281_v61 = vmul.f32 %v1147_v41, %v1147_v41  ;;  %v1306_v29 = vsel %vm517_vm3, %v1279_v15, 0.0  ;;  %v1255_v30 = vsel %vm517_vm3, %v1146_v11, 0.0 }
 0x1ab   : > { %v1299_v48 = vadd.f32 %v1298_v34, %v1297_v17  ;;  %v1257_v40 = vsel %vm517_vm3, %v1147_v41, 0.0  ;;  %v1282_v63 = vmul.f32 %v2679_v6, %v2679_v6  ;;  %v1308_v31 = vsel %vm517_vm3, %v1280_v45, 0.0 }
 0x1ac   : > { %v1250_v39 = vadd.f32 %v1249_v2, %v1248_v0  ;;  %v1310_v5 = vsel %vm517_vm3, %v1281_v61, 0.0  ;;  %v1259_v54 = vsel %vm517_vm3, %v2679_v6, 0.0 }
 0x1ad   : > { %v1301_v13 = vadd.f32 %v1300_v3, %v1299_v48  ;;  %v1312_v46 = vsel %vm517_vm3, %v1282_v63, 0.0 }
 0x1ae   : > { %v1252_v25 = vadd.f32 %v1251_v9, %v1250_v39 }
 0x1af   : > { %v1303_v42 = vadd.f32 %v1302_v14, %v1301_v13 }
 0x1b0   : > { %v1254_v28 = vadd.f32 %v1253_v23, %v1252_v25 }
 0x1b1   : > { %v1305_v27 = vadd.f32 %v1304_v8, %v1303_v42 }
 0x1b2   : > { %v1256_v32 = vadd.f32 %v1255_v30, %v1254_v28 }
 0x1b3   : > { %v1307_v24 = vadd.f32 %v1306_v29, %v1305_v27 }
 0x1b4   : > { %v1258_v35 = vadd.f32 %v1257_v40, %v1256_v32 }
 0x1b5   : > { %v1309_v10 = vadd.f32 %v1308_v31, %v1307_v24 }
 0x1b6   : > { %v1260_v33 = vadd.f32 %v1259_v54, %v1258_v35 }
 0x1b7   : > { %v1311_v38 = vadd.f32 %v1310_v5, %v1309_v10 }
 0x1b8   : > { %v1261_v12 = vrot.slane %v1260_v33, 4 }
 0x1b9   : > { %v1313_v56 = vadd.f32 %v1312_v46, %v1311_v38 }
 0x1ba   : > { %v1262_v41 = vadd.f32 %v1261_v12, %v1260_v33 }
 0x1bb   : > { %v1314_v47 = vrot.slane %v1313_v56, 4 }
 0x1bc   : > { %v1263_v11 = vrot.slane %v1262_v41, 2 }
 0x1bd   : > { %v1315_v19 = vadd.f32 %v1314_v47, %v1313_v56 }
 0x1be   : > { %v1264_v22 = vadd.f32 %v1263_v11, %v1262_v41 }
 0x1bf   : > { %v1316_v57 = vrot.slane %v1315_v19, 2 }
 0x1c0   : > { %v1265_v4 = vrot.slane %v1264_v22, 1 }
 0x1c1   : > { %v1317_v43 = vadd.f32 %v1316_v57, %v1315_v19 }
 0x1c2   : > { %v1266_v6 = vadd.f32 %v1265_v4, %v1264_v22 }
 0x1c3   : > { %v1318_v26 = vrot.slane %v1317_v43, 1 }
 0x1c5   : > { %v1319_v49 = vadd.f32 %v1318_v26, %v1317_v43 }
 0x1c7   : > { %v1320_v55 = vsel %vm306_vm1, %v1266_v6, %v1319_v49 }
 0x1c8   : > { %1322 = vst.msk [vmem:[%s243_s30] sm:$0x3] %vm1321_vm7, %v1320_v55 }
 0x1c9 PF: > { %s15_s19 = sadd.s32 1, %s2057_s19   ;;  %s2761_s15 = smov %s2049_s17 }
 0x1ca   : > { %p12_p11 = scmp.ge.s32.totalorder %s15_s19, 6   ;;  %s2762_s16 = smov %s2053_s18 }
 0x1cb   : > { %s2763_s17 = smov %s2766_s20  ;;  %s2764_s18 = smov %s2770_s21 }
 0x1cc   :  { %14 = sbr.rel (!%p12_p11) target bundleno = 3 (0x3), region = 79 }

// kernel: _lambda_.4
= control target key start
LH: loop header
LB: loop body
LE: loop exit
PB: predicated region body
PF: predicated region fallthrough
CT: control target
= control target key end

     0   :  { %s2290_s21 = smov 0   ;;  %s2292_s22 = smov 0   ;;  %s3011_s0 = inlined_call_operand.vmem [shape: bf16[2,16,16,8], index: 0, kind: input, shape index: {}]   ;;  %s3012_s1 = inlined_call_operand.vmem [shape: f32[1,8], index: 1, kind: input, shape index: {}]   ;;  %s3013_s2 = inlined_call_operand.vmem [shape: f32[1,8], index: 2, kind: input, shape index: {}]   ;;  %s3014_s3 = inlined_call_operand.vmem [shape: bf16[3,128,8], index: 3, kind: input, shape index: {}]   ;;  %s3015_s4 = inlined_call_operand.vmem [shape: f32[1,8], index: 4, kind: input, shape index: {}]   ;;  %s3016_s5 = inlined_call_operand.vmem [shape: bf16[2,16,16,8], index: 5, kind: output, shape index: {0}]   ;;  %s3017_s6 = inlined_call_operand.vmem [shape: f32[2,2,2,8], index: 6, kind: output, shape index: {1}]  }
   0x1   :  { %s2294_s23 = smov 0   ;;  %s2296_s24 = smov 0  }
   0x2   :  { %s2298_s25 = smov 0  }
   0x3 LB: > { %s26_s26 = sadd.s32 1, %s2243_s23  ;;  %s29_s27 = sadd.s32 1, %s2247_s24  ;;  %s2251_s25 = sphi %s2298_s25, %s17_s25   ;;  %s2247_s24 = sphi %s2296_s24, %s3026_s24   ;;  %s2243_s23 = sphi %s2294_s23, %s3025_s23   ;;  %s2239_s22 = sphi %s2292_s22, %s3024_s22   ;;  %s2235_s21 = sphi %s2290_s21, %s3023_s21  }
   0x4   : > { %p27_p0 = scmp.ge.s32.totalorder %s26_s26, 2  ;;  %p1621_p1 = scmp.ge.s32.totalorder %s2251_s25, 1 }
   0x5   : > { %p231_p2 = scmp.lt.s32.totalorder %s2251_s25, 5 }
   0x6   : > { %s3028_s26 = smov (%p27_p0, %s26_s26), 0  ;;  %s3030_s27 = smov (!%p27_p0, %s29_s27), %s2247_s24 }
   0x7   : > { %p232_p3 = pnand %p1621_p1, %p231_p2  ;;  %p31_p4 = scmp.ge.s32.totalorder %s3030_s27, 2 }
   0x8   : > { %p274_p5 = scmp.lt.s32.totalorder (!%p232_p3), %s2239_s22, 1  ;;  %s2323_s28 = sshll.u32 (!%p232_p3), %s2235_s21, 3  ;;  %v2189_v0 = vld [vmem:[%s3014_s3] sm:$0xff] (!%p232_p3)   ;;  %v2190_v1 = vld [vmem:[%s3014_s3 + $0x8] sm:$0xff] (!%p232_p3)   ;;  %v2192_v3 = vld [vmem:[%s3014_s3 + $0x10] sm:$0xff] (!%p232_p3)   ;;  %vm506_vm1 = vcmask (!%p232_p3), 1046528  }
   0x9   : > { %s3032_s27 = smov (%p31_p4, %s3030_s27), 0  ;;  %235 = sbr.rel (%p232_p3) target bundleno = 466 (0x1d2), region = 40 }
   0xa   : > { %p282_p6 = scmp.lt.s32.totalorder (!%p232_p3), %s2323_s28, 15  ;;  %1935 = vmatprep.subr.bf16.mxu0 (!%p232_p3), %v2189_v0  ;;  %v2191_v2 = vld [vmem:[%s3014_s3 + $0x40] sm:$0xff] (!%p232_p3)   ;;  %s1635_s18 = sadd.s32 (!%p232_p3), 4294967295, %s2323_s28  ;;  %v2193_v4 = vld [vmem:[%s3014_s3 + $0x48] sm:$0xff] (!%p232_p3)   ;;  %v2195_v5 = vld [vmem:[%s3014_s3 + $0x50] sm:$0xff] (!%p232_p3)   ;;  %vm457_vm2 = vcmask (!%p232_p3), 1040384  }
   0xb   : > { %1936 = vmatpush3.bf16.msra.mxu0 (!%p232_p3), %v2189_v0  ;;  %1903 = vmatprep.subr.bf16.mxu1 (!%p232_p3), %v2191_v2  ;;  %s1789_s29 = sshll.u32 (!%p232_p3), %s2235_s21, 6  ;;  %p398_p7 = scmp.gt.s32.totalorder (!%p232_p3), %s1635_s18, 0  ;;  %v2194_v6 = vld [vmem:[%s3014_s3 + $0x18] sm:$0xff] (!%p232_p3)   ;;  %v2365_v7 = vld [vmem:[%s3012_s1] ss:$0 sm:$0xff] (!%p232_p3)  ;;  %v2198_v34 = vld [vmem:[%s3014_s3 + $0x28] sm:$0xff] (!%p232_p3)  }
   0xc   : > { %1937 = vmatprep.subr.bf16.mxu0 (!%p232_p3), %v2190_v1  ;;  %1904 = vmatpush3.bf16.msra.mxu1 (!%p232_p3), %v2191_v2  ;;  %p429_p8 = scmp.gt.s32.totalorder (!%p232_p3), %s2235_s21, 0  ;;  %v2197_v8 = vld [vmem:[%s3014_s3 + $0x58] sm:$0xff] (!%p232_p3)   ;;  %v2196_v10 = vld [vmem:[%s3014_s3 + $0x20] sm:$0xff] (!%p232_p3)   ;;  %p292_p9 = scmp.lt.s32.totalorder (!%p232_p3), %s2235_s21, 1  ;;  %v2201_v43 = vld [vmem:[%s3014_s3 + $0x68] sm:$0xff] (!%p232_p3)   ;;  %vm651_vm4 = vcmask (!%p232_p3), 64512  }
   0xd   : > { %1905 = vmatprep.subr.bf16.mxu1 (!%p232_p3), %v2193_v4  ;;  %v2389_v20 = vld [vmem:[%s3013_s2] ss:$0 sm:$0xff] (!%p232_p3)  ;;  %v2200_v52 = vld [vmem:[%s3014_s3 + $0x30] sm:$0xff] (!%p232_p3)   ;;  %s2254_s8 = smov (!%p232_p3), 16   ;;  %vm668_vm5 = vcmask (!%p232_p3), 130048   ;;  %vm685_vm6 = vcmask (!%p232_p3), 195584  }
   0xe   : > { %v2199_v29 = vld [vmem:[%s3014_s3 + $0x60] sm:$0xff] (!%p232_p3)   ;;  %v2203_v59 = vld [vmem:[%s3014_s3 + $0x70] sm:$0xff] (!%p232_p3)   ;;  %vm2678_vm7 = vmpackc.low (!%p232_p3), %vm685_vm6, %vm685_vm6  ;;  %vm1364_vm8 = vcmask (!%p232_p3), 60416   ;;  %vm1472_vm9 = vcmask (!%p232_p3), 58368  }
   0xf   : > { %1938 = vmatpush3.bf16.msra.mxu0 (!%p232_p3), %v2190_v1  ;;  %v2202_v1 = vld [vmem:[%s3014_s3 + $0x38] sm:$0xff] (!%p232_p3)  }
  0x10   : > { %s3034_s22 = smov (!%p274_p5, %s2239_s22), 1  ;;  %s3036_s18 = smov (!%p398_p7, %s1635_s18), 0  ;;  %1939 = vmatprep.subr.bf16.mxu0 %v2192_v3  ;;  %1906 = vmatpush3.bf16.msra.mxu1 %v2193_v4 }
  0x11   : > { %s283_s9 = scalar_select %p282_p6, %s2323_s28, 15  ;;  %1907 = vmatprep.subr.bf16.mxu1 %v2195_v5 }
  0x12   : > { %s1787_s12 = sshll.u32 %s3034_s22, 7  ;;  %s1626_s13 = sshll.u32 %s3034_s22, 5 }
  0x13   : > { %s1625_s14 = sshll.u32 %s283_s9, 1  ;;  %s2356_s10 = scalar_lea.vmem %s3011_s0, %s1787_s12  ;;  %1940 = vmatpush3.bf16.msra.mxu0 %v2192_v3 }
  0x14   : > { %s2343_s17 = sadd.s32 %s1626_s13, %s1625_s14  ;;  %s1790_s12 = sshll.u32 %s3036_s18, 3  ;;  %1941 = vmatprep.subr.bf16.mxu0 %v2194_v6  ;;  %1908 = vmatpush3.bf16.msra.mxu1 %v2195_v5 }
  0x15   : > { %s430_s14 = scalar_select %p429_p8, 1, 0  ;;  %1909 = vmatprep.subr.bf16.mxu1 %v2197_v8 }
  0x16   : > { %s402_s30 = scalar_lea.vmem %s2356_s10, %s1790_s12  ;;  %s2372_s7 = scalar_lea.vmem %s2356_s10, %s1789_s29 }
  0x17   : > { %v431_v9 = vstv %s430_s14  ;;  %v1841_v11 = vld [vmem:[%s402_s30] sm:$0xff]   ;;  %v1848_v14 = vld [vmem:[%s2372_s7 + $0x8] sm:$0xff]   ;;  %v1849_v19 = vld [vmem:[%s2372_s7 + $0x10] sm:$0xff]   ;;  %s1628_s18 = sshll.u32 %s3034_s22, 1  ;;  %1942 = vmatpush3.bf16.msra.mxu0 %v2194_v6  ;;  %s413_s30 = sadd.s32 8, %s2323_s28 }
  0x18   : > { %vm2377_vm0 = vcmp.eq.s32.totalorder %v431_v9, 1  ;;  %v1809_v13 = vld [vmem:[%s2372_s7] sm:$0xff]   ;;  %v1842_v15 = vunpack.c.l.bf16 %v1841_v11  ;;  %v1843_v16 = vunpack.c.h.bf16 %v1841_v11  ;;  %v1814_v21 = vunpack.c.l.bf16 %v1848_v14  ;;  %s293_s13 = scalar_select %p292_p9, %s2235_s21, 1  ;;  %1943 = vmatprep.subr.bf16.mxu0 %v2196_v10  ;;  %1910 = vmatpush3.bf16.msra.mxu1 %v2197_v8  ;;  %v1850_v58 = vld [vmem:[%s2372_s7 + $0x18] sm:$0xff]   ;;  %v1852_v6 = vld [vmem:[%s2372_s7 + $0x28] sm:$0xff]  }
  0x19   : > { %v1810_v17 = vunpack.c.l.bf16 %v1809_v13  ;;  %v1811_v18 = vunpack.c.h.bf16 %v1809_v13  ;;  %v1815_v22 = vunpack.c.h.bf16 %v1848_v14  ;;  %v1818_v23 = vunpack.c.l.bf16 %v1849_v19  ;;  %1911 = vmatprep.subr.bf16.mxu1 %v2199_v29  ;;  %v1851_v0 = vld [vmem:[%s2372_s7 + $0x20] sm:$0xff]   ;;  %p2462_p10 = scmp.lt.s32.totalorder %s413_s30, 15  ;;  %s2253_s14 = smov 8   ;;  %v1853_v8 = vld [vmem:[%s2372_s7 + $0x30] sm:$0xff]  }
  0x1a   : > { %v1819_v24 = vunpack.c.h.bf16 %v1849_v19  ;;  %v407_v25 = vmul.f32 %v1842_v15, %v2365_v7  ;;  %v408_v26 = vmul.f32 %v1843_v16, %v2365_v7  ;;  %v344_v30 = vmul.f32 %v1814_v21, %v2365_v7  ;;  %s2405_s15 = sadd.s32 %s1628_s18, %s293_s13 }
  0x1b   : > { %v342_v27 = vmul.f32 %v1810_v17, %v2365_v7  ;;  %v343_v28 = vmul.f32 %v1811_v18, %v2365_v7  ;;  %v345_v31 = vmul.f32 %v1815_v22, %v2365_v7  ;;  %v346_v32 = vmul.f32 %v1818_v23, %v2365_v7  ;;  %1944 = vmatpush3.bf16.msra.mxu0 %v2196_v10  ;;  %v2205_v17 = vld [vmem:[%s3014_s3 + $0x78] sm:$0xff]   ;;  %v2493_v23 = vld [vmem:[%s3014_s3 + $0x80] sm:$0xff]   ;;  %s3038_s30 = smov (!%p2462_p10, %s413_s30), 15 }
  0x1c   : > { %v347_v33 = vmul.f32 %v1819_v24, %v2365_v7  ;;  %v409_v35 = vadd.f32 %v2389_v20, %v407_v25  ;;  %v410_v36 = vadd.f32 %v2389_v20, %v408_v26  ;;  %v367_v39 = vadd.f32 %v2389_v20, %v344_v30  ;;  %1945 = vmatprep.subr.bf16.mxu0 %v2198_v34  ;;  %s1791_s28 = sshll.u32 %s3038_s30, 3 }
  0x1d   : > { %v365_v37 = vadd.f32 %v2389_v20, %v342_v27  ;;  %v366_v38 = vadd.f32 %v2389_v20, %v343_v28  ;;  %v368_v40 = vadd.f32 %v2389_v20, %v345_v31  ;;  %v369_v41 = vadd.f32 %v2389_v20, %v346_v32  ;;  %1912 = vmatpush3.bf16.msra.mxu1 %v2199_v29 }
  0x1e   : > { %v370_v42 = vadd.f32 %v2389_v20, %v347_v33  ;;  %v411_v44 = vmax.f32 %v409_v35, 0.0  ;;  %v412_v45 = vmax.f32 %v410_v36, 0.0  ;;  %v2425_v48 = vmax.f32 %v367_v39, 0.0  ;;  %1913 = vmatprep.subr.bf16.mxu1 %v2201_v43 }
  0x1f   : > { %v2421_v46 = vmax.f32 %v365_v37, 0.0  ;;  %v2423_v47 = vmax.f32 %v366_v38, 0.0  ;;  %v2427_v49 = vmax.f32 %v368_v40, 0.0  ;;  %v2429_v50 = vmax.f32 %v369_v41, 0.0  ;;  %1946 = vmatpush3.bf16.msra.mxu0 %v2198_v34 }
  0x20   : > { %v2431_v51 = vmax.f32 %v370_v42, 0.0  ;;  %v2439_v53 = vsel %vm2377_vm0, %v411_v44, 0.0  ;;  %v2443_v54 = vsel %vm2377_vm0, %v412_v45, 0.0  ;;  %v513_v2 = vrot.slane %v2425_v48, 1  ;;  %1947 = vmatprep.subr.bf16.mxu0 %v2200_v52 }
  0x21   : > { %v510_v55 = vrot.slane %v2421_v46, 1  ;;  %v2089_v56 = vpack.i.bf16 %v2443_v54, %v2439_v53  ;;  %v507_v57 = vrot.slane %v2439_v53, 1  ;;  %v508_v60 = vrot.slane %v2443_v54, 1  ;;  %1914 = vmatpush3.bf16.msra.mxu1 %v2201_v43 }
  0x22   : > { %v2094_v61 = vpack.i.bf16 %v2423_v47, %v2421_v46  ;;  %v511_v62 = vrot.slane %v2423_v47, 1  ;;  %v2109_v63 = vpack.i.bf16 %v2427_v49, %v2425_v48  ;;  %v514_v3 = vrot.slane %v2427_v49, 1  ;;  %1915 = vmatprep.subr.bf16.mxu1 %v2203_v59 }
  0x23   : > { %2090 = vrot.lane.b32.xlu0 %v2089_v56, %s2253_s14  ;;  %v516_v4 = vrot.slane %v2429_v50, 1  ;;  %v517_v5 = vrot.slane %v2431_v51, 1  ;;  %v509_v9 = vsel %vm506_vm1, %v507_v57, %v508_v60  ;;  %v539_v10 = vsel %vm506_vm1, %v508_v60, 0.0  ;;  %1948 = vmatpush3.bf16.msra.mxu0 %v2200_v52 }
  0x24   : > { %v512_v11 = vsel %vm506_vm1, %v510_v55, %v511_v62  ;;  %v540_v12 = vsel %vm506_vm1, %v511_v62, 0.0  ;;  %v2099_v13 = vpack.i.bf16 %v539_v10, %v509_v9  ;;  %v2114_v14 = vpack.i.bf16 %v2431_v51, %v2429_v50  ;;  %1949 = vmatprep.subr.bf16.mxu0 %v2202_v1 }
  0x25   : > { %v515_v15 = vsel %vm506_vm1, %v513_v2, %v514_v3  ;;  %v541_v16 = vsel %vm506_vm1, %v514_v3, 0.0  ;;  %v2104_v18 = vpack.i.bf16 %v540_v12, %v512_v11  ;;  %v2488_v21 = vsel %vm506_vm1, %v516_v4, %v517_v5  ;;  %1916 = vmatpush3.bf16.msra.mxu1 %v2203_v59  ;;  %v1854_v59 = vld [vmem:[%s2372_s7 + $0x38] sm:$0xff]   ;;  %s418_s7 = scalar_lea.vmem %s2356_s10, %s1791_s28 }
  0x26   : > { %v2119_v19 = vpack.i.bf16 %v541_v16, %v515_v15  ;;  %v1822_v22 = vunpack.c.l.bf16 %v1850_v58  ;;  %2100 = vrot.lane.b32.xlu1 %v2099_v13, %s2254_s8  ;;  %v542_v24 = vsel %vm506_vm1, %v517_v5, 0.0  ;;  %v1823_v25 = vunpack.c.h.bf16 %v1850_v58  ;;  %1917 = vmatprep.subr.bf16.mxu1 %v2205_v17  ;;  %v1845_v15 = vld [vmem:[%s418_s7] sm:$0xff]   ;;  %s436_s10 = scalar_select %p292_p9, 1, 0 }
  0x27   : > { %2095 = vrot.lane.b32.xlu0 %v2094_v61, %s2253_s14  ;;  %v1826_v26 = vunpack.c.l.bf16 %v1851_v0  ;;  %v1827_v27 = vunpack.c.h.bf16 %v1851_v0  ;;  %v1830_v29 = vunpack.c.l.bf16 %v1852_v6  ;;  %v1831_v30 = vunpack.c.h.bf16 %v1852_v6  ;;  %1950 = vmatpush3.bf16.msra.mxu0 %v2202_v1 }
  0x28   : > { %v348_v28 = vmul.f32 %v1822_v22, %v2365_v7  ;;  %v1834_v31 = vunpack.c.l.bf16 %v1853_v8  ;;  %v349_v32 = vmul.f32 %v1823_v25, %v2365_v7  ;;  %v1835_v35 = vunpack.c.h.bf16 %v1853_v8  ;;  %1967 = vmatprep.subr.bf16.mxu0 %v2493_v23 }
  0x29   : > { %v350_v33 = vmul.f32 %v1826_v26, %v2365_v7  ;;  %v351_v34 = vmul.f32 %v1827_v27, %v2365_v7  ;;  %v352_v37 = vmul.f32 %v1830_v29, %v2365_v7  ;;  %v353_v38 = vmul.f32 %v1831_v30, %v2365_v7  ;;  %1918 = vmatpush3.bf16.msra.mxu1 %v2205_v17 }
  0x2a   : > { %v371_v36 = vadd.f32 %v2389_v20, %v348_v28  ;;  %v354_v39 = vmul.f32 %v1834_v31, %v2365_v7  ;;  %2105 = vrot.lane.b32.xlu1 %v2104_v18, %s2254_s8  ;;  %v372_v40 = vadd.f32 %v2389_v20, %v349_v32  ;;  %v355_v52 = vmul.f32 %v1835_v35, %v2365_v7 }
  0x2b   : > { %2110 = vrot.lane.b32.xlu0 %v2109_v63, %s2253_s14  ;;  %v373_v41 = vadd.f32 %v2389_v20, %v350_v33  ;;  %v374_v42 = vadd.f32 %v2389_v20, %v351_v34  ;;  %v375_v44 = vadd.f32 %v2389_v20, %v352_v37  ;;  %v376_v45 = vadd.f32 %v2389_v20, %v353_v38 }
  0x2c   : > { %v2517_v43 = vmax.f32 %v371_v36, 0.0  ;;  %v2124_v55 = vpack.i.bf16 %v542_v24, %v2488_v21  ;;  %v2525_v56 = vmax.f32 %v372_v40, 0.0  ;;  %1999 = vmatprep.subr.bf16.mxu1 %v2493_v23  ;;  %v377_v63 = vadd.f32 %v2389_v20, %v354_v39 }
  0x2d   : > { %v2527_v57 = vmax.f32 %v373_v41, 0.0  ;;  %v2529_v58 = vmax.f32 %v374_v42, 0.0  ;;  %v2534_v61 = vmax.f32 %v375_v44, 0.0  ;;  %v2536_v62 = vmax.f32 %v376_v45, 0.0 }
  0x2e   : > { %v519_v60 = vrot.slane %v2517_v43, 1  ;;  %2115 = vrot.lane.b32.xlu1 %v2114_v14, %s2253_s14  ;;  %v2129_v0 = vpack.i.bf16 %v2525_v56, %v2517_v43  ;;  %v520_v1 = vrot.slane %v2525_v56, 1  ;;  %v378_v3 = vadd.f32 %v2389_v20, %v355_v52 }
  0x2f   : > { %2120 = vrot.lane.b32.xlu0 %v2119_v19, %s2254_s8  ;;  %v522_v2 = vrot.slane %v2527_v57, 1  ;;  %v523_v4 = vrot.slane %v2529_v58, 1  ;;  %v1838_v5 = vunpack.c.l.bf16 %v1854_v59  ;;  %v525_v9 = vrot.slane %v2534_v61, 1 }
  0x30   : > { %v521_v6 = vsel %vm506_vm1, %v519_v60, %v520_v1  ;;  %v543_v8 = vsel %vm506_vm1, %v520_v1, 0.0  ;;  %v526_v10 = vrot.slane %v2536_v62, 1  ;;  %v459_v11 = vrot.slane %v2443_v54, 7 }
  0x31   : > { %v524_v12 = vsel %vm506_vm1, %v522_v2, %v523_v4  ;;  %v544_v13 = vsel %vm506_vm1, %v523_v4, 0.0  ;;  %v2555_v14 = vmax.f32 %v377_v63, 0.0  ;;  %v458_v16 = vrot.slane %v2439_v53, 7 }
  0x32   : > { %2125 = vrot.lane.b32.xlu1 %v2124_v55, %s2254_s8  ;;  %v2134_v17 = vpack.i.bf16 %v2529_v58, %v2527_v57  ;;  %v2139_v18 = vpack.i.bf16 %v543_v8, %v521_v6  ;;  %v2562_v19 = vmax.f32 %v378_v3, 0.0  ;;  %v2144_v54 = vpack.i.bf16 %v544_v13, %v524_v12 }
  0x33   : > { %2130 = vrot.lane.b32.xlu0 %v2129_v0, %s2253_s14  ;;  %v2149_v21 = vpack.i.bf16 %v2536_v62, %v2534_v61  ;;  %v1839_v22 = vunpack.c.h.bf16 %v1854_v59  ;;  %v356_v24 = vmul.f32 %v1838_v5, %v2365_v7  ;;  %v527_v25 = vsel %vm506_vm1, %v525_v9, %v526_v10 }
  0x34   : > { %v545_v26 = vsel %vm506_vm1, %v526_v10, 0.0  ;;  %v1846_v27 = vunpack.c.l.bf16 %v1845_v15  ;;  %v1847_v28 = vunpack.c.h.bf16 %v1845_v15  ;;  %v528_v29 = vrot.slane %v2555_v14, 1 }
  0x35   : > { %v357_v30 = vmul.f32 %v1839_v22, %v2365_v7  ;;  %v379_v31 = vadd.f32 %v2389_v20, %v356_v24  ;;  %v529_v32 = vrot.slane %v2562_v19, 1  ;;  %v437_v35 = vstv %s436_s10  ;;  %s1627_s10 = sshll.u32 %s2343_s17, 2  ;;  %s1629_s17 = sshll.u32 %s2405_s15, 1 }
  0x36   : > { %2135 = vrot.lane.b32.xlu1 %v2134_v17, %s2253_s14  ;;  %v423_v33 = vmul.f32 %v1846_v27, %v2365_v7  ;;  %v424_v34 = vmul.f32 %v1847_v28, %v2365_v7  ;;  %v464_v38 = vrot.slane %v2425_v48, 7  ;;  %v465_v39 = vrot.slane %v2427_v49, 7  ;;  %s2867_s9 = scalar_lea.vmem %s3016_s5, %s1627_s10  ;;  %s297_s11 = scalar_lea.vmem %s3017_s6, %s1629_s17 }
  0x37   : > { %2140 = vrot.lane.b32.xlu0 %v2139_v18, %s2254_s8  ;;  %v380_v36 = vadd.f32 %v2389_v20, %v357_v30  ;;  %v2580_v37 = vmax.f32 %v379_v31, 0.0  ;;  %v2589_v42 = vsel %vm457_vm2, %v458_v16, %v459_v11  ;;  %vm438_vm3 = vcmp.eq.s32.totalorder %v437_v35, 1 }
  0x38   : > { %v425_v40 = vadd.f32 %v2389_v20, %v423_v33  ;;  %v426_v41 = vadd.f32 %v2389_v20, %v424_v34  ;;  %v2595_v45 = vsel %vm457_vm2, %v464_v38, %v465_v39  ;;  %v2154_v20 = vpack.i.bf16 %v2562_v19, %v2555_v14 }
  0x39   : > { %v396_v44 = vmax.f32 %v380_v36, 0.0  ;;  %v734_v7 = vrot.slane %v2580_v37, 1  ;;  %v2159_v49 = vpack.i.bf16 %v545_v26, %v527_v25  ;;  %v530_v59 = vsel %vm506_vm1, %v528_v29, %v529_v32 }
  0x3a   : > { %2145 = vrot.lane.b32.xlu1 %v2144_v54, %s2254_s8  ;;  %v427_v52 = vmax.f32 %v425_v40, 0.0  ;;  %v428_v55 = vmax.f32 %v426_v41, 0.0  ;;  %v546_v60 = vsel %vm506_vm1, %v529_v32, 0.0  ;;  %v467_v0 = vrot.slane %v2429_v50, 7  ;;  %v2207_v50 = vld [vmem:[%s3014_s3 + $0x90] sm:$0xff]  }
  0x3b   : > { %2150 = vrot.lane.b32.xlu0 %v2149_v21, %s2253_s14  ;;  %v735_v63 = vrot.slane %v396_v44, 1  ;;  %v468_v3 = vrot.slane %v2431_v51, 7  ;;  %v461_v6 = vrot.slane %v2421_v46, 7  ;;  %v2164_v8 = vpack.i.bf16 %v546_v60, %v530_v59 }
  0x3c   : > { %v2604_v1 = vsel %vm438_vm3, %v427_v52, 0.0  ;;  %v440_v2 = vsel %vm438_vm3, %v428_v55, 0.0  ;;  %v2169_v9 = vpack.i.bf16 %v396_v44, %v2580_v37  ;;  %v462_v13 = vrot.slane %v2423_v47, 7 }
  0x3d   : > { %v736_v4 = vsel %vm506_vm1, %v734_v7, %v735_v63  ;;  %v738_v5 = vsel %vm506_vm1, %v735_v63, 0.0  ;;  %v1074_v10 = vrot.slane %v2604_v1, 1  ;;  %v1075_v11 = vrot.slane %v440_v2, 1 }
  0x3e   : > { %2155 = vrot.lane.b32.xlu1 %v2154_v20, %s2253_s14  ;;  %v1069_v12 = vrot.slane %v440_v2, 7  ;;  %v2617_v51 = vsel %vm457_vm2, %v467_v0, %v468_v3  ;;  %v2174_v15 = vpack.i.bf16 %v738_v5, %v736_v4  ;;  %v2179_v46 = vpack.i.bf16 %v440_v2, %v2604_v1 }
  0x3f   : > { %2160 = vrot.lane.b32.xlu0 %v2159_v49, %s2254_s8  ;;  %v470_v17 = vrot.slane %v2517_v43, 7  ;;  %v471_v18 = vrot.slane %v2525_v56, 7  ;;  %v1068_v54 = vrot.slane %v2604_v1, 7  ;;  %v463_v21 = vsel %vm457_vm2, %v461_v6, %v462_v13 }
  0x40   : > { %v473_v22 = vrot.slane %v2527_v57, 7  ;;  %v474_v24 = vrot.slane %v2529_v58, 7  ;;  %v1076_v47 = vsel %vm506_vm1, %v1074_v10, %v1075_v11  ;;  %v476_v56 = vrot.slane %v2534_v61, 7  ;;  %v2209_v57 = vld [vmem:[%s3014_s3 + $0xa0] sm:$0xff]  }
  0x41   : > { %v2633_v25 = vsel %vm457_vm2, %v470_v17, %v471_v18  ;;  %v477_v26 = vrot.slane %v2536_v62, 7  ;;  %v1078_v27 = vsel %vm506_vm1, %v1075_v11, 0.0  ;;  %v479_v28 = vrot.slane %v2555_v14, 7  ;;  %v2211_v14 = vld [vmem:[%s3014_s3 + $0xb0] sm:$0xff]  }
  0x42   : > { %2165 = vrot.lane.b32.xlu1 %v2164_v8, %s2254_s8  ;;  %v2641_v58 = vsel %vm457_vm2, %v473_v22, %v474_v24  ;;  %v480_v29 = vrot.slane %v2562_v19, 7  ;;  %v728_v31 = vrot.slane %v2580_v37, 7  ;;  %v729_v32 = vrot.slane %v396_v44, 7 }
  0x43   : > { %2170 = vrot.lane.b32.xlu0 %v2169_v9, %s2253_s14  ;;  %v2648_v30 = vsel %vm457_vm2, %v476_v56, %v477_v26  ;;  %v2184_v33 = vpack.i.bf16 %v1078_v27, %v1076_v47  ;;  %v2666_v34 = vsel %vm457_vm2, %v1068_v54, %v1069_v12  ;;  %v498_v40 = vsel %vm457_vm2, 0.0, %v458_v16 }
  0x44   : > { %v2654_v62 = vsel %vm457_vm2, %v479_v28, %v480_v29  ;;  %v2661_v19 = vsel %vm457_vm2, %v728_v31, %v729_v32  ;;  %v499_v49 = vsel %vm457_vm2, 0.0, %v461_v6 }
  0x46   : > { %2175 = vrot.lane.b32.xlu1 %v2174_v15, %s2254_s8 }
  0x47   : > { %2180 = vrot.lane.b32.xlu0 %v2179_v46, %s2253_s14 }
  0x4a   : > { %2185 = vrot.lane.b32.xlu1 %v2184_v33, %s2254_s8 }
  0x95   : > { %v2091_v35 = vpop.permute.xlu0 %2090 }
  0x96   : > { %v2093_v36 = vunpack.i.h.bf16 %v2091_v35  ;;  %v2092_v39 = vunpack.i.l.bf16 %v2091_v35 }
  0x98   : > { %v2101_v41 = vpop.permute.xlu1 %2100  ;;  %v652_v7 = vsel %vm651_vm4, %v498_v40, %v2092_v39  ;;  %v653_v20 = vsel %vm651_vm4, %v2589_v42, %v2093_v36  ;;  %v500_v42 = vsel %vm457_vm2, 0.0, %v464_v38  ;;  %v502_v36 = vsel %vm457_vm2, 0.0, %v470_v17 }
  0x99   : > { %v2096_v44 = vpop.permute.xlu0 %2095  ;;  %v2103_v52 = vunpack.i.h.bf16 %v2101_v41  ;;  %v2102_v55 = vunpack.i.l.bf16 %v2101_v41 }
  0x9a   : > { %v2098_v59 = vunpack.i.h.bf16 %v2096_v44  ;;  %v2097_v60 = vunpack.i.l.bf16 %v2096_v44 }
  0x9b   : > { %v669_v63 = vsel %vm668_vm5, %v652_v7, %v2102_v55  ;;  %v670_v53 = vsel %vm668_vm5, %v653_v20, %v2103_v52 }
  0x9c   : > { %v2106_v2 = vpop.permute.xlu1 %2105  ;;  %v1697_v4 = vpack.c.bf16 %v670_v53, %v669_v63  ;;  %v654_v5 = vsel %vm651_vm4, %v499_v49, %v2097_v60  ;;  %v655_v6 = vsel %vm651_vm4, %v463_v21, %v2098_v59  ;;  %v2206_v21 = vld [vmem:[%s3014_s3 + $0x88] sm:$0xff]   ;;  %v2208_v60 = vld [vmem:[%s3014_s3 + $0x98] sm:$0xff]  }
  0x9d   : > { %v2111_v3 = vpop.permute.xlu0 %2110  ;;  %v2108_v8 = vunpack.i.h.bf16 %v2106_v2  ;;  %v2107_v9 = vunpack.i.l.bf16 %v2106_v2 }
  0x9e   : > { %v2113_v10 = vunpack.i.h.bf16 %v2111_v3  ;;  %v2112_v11 = vunpack.i.l.bf16 %v2111_v3  ;;  %1951 = vmatprep.mubr.msk.bf16.mxu0 %vm2678_vm7, %v1697_v4 }
  0x9f   : > { %v671_v12 = vsel %vm668_vm5, %v654_v5, %v2107_v9  ;;  %v672_v13 = vsel %vm668_vm5, %v655_v6, %v2108_v8  ;;  %v504_v6 = vsel %vm457_vm2, 0.0, %v476_v56 }
  0xa0   : > { %v657_v48 = vsel %vm651_vm4, %v2595_v45, %v2113_v10  ;;  %v656_v38 = vsel %vm651_vm4, %v500_v42, %v2112_v11  ;;  %v2116_v15 = vpop.permute.xlu1 %2115  ;;  %v1665_v18 = vpack.c.bf16 %v672_v13, %v671_v12  ;;  %v501_v45 = vsel %vm457_vm2, 0.0, %v467_v0 }
  0xa1   : > { %v2121_v46 = vpop.permute.xlu0 %2120  ;;  %v2118_v26 = vunpack.i.h.bf16 %v2116_v15  ;;  %v2117_v27 = vunpack.i.l.bf16 %v2116_v15 }
  0xa2   : > { %v2123_v24 = vunpack.i.h.bf16 %v2121_v46  ;;  %v2122_v47 = vunpack.i.l.bf16 %v2121_v46  ;;  %1919 = vmatprep.mubr.msk.bf16.mxu1 %vm2678_vm7, %v1665_v18  ;;  %1952 = vmatmul.mubr.msk.bf16.vlgmr.msra.gmra.mrb[0].mxu0 %vm2678_vm7, %v1665_v18  ;;  %v2210_v18 = vld [vmem:[%s3014_s3 + $0xa8] sm:$0xff]  }
  0xa3   : > { %1968 = vmatpush3.bf16.msra.mxu0 %v2493_v23  ;;  %v659_v7 = vsel %vm651_vm4, %v2617_v51, %v2118_v26  ;;  %v658_v20 = vsel %vm651_vm4, %v501_v45, %v2117_v27 }
  0xa4   : > { %v673_v29 = vsel %vm668_vm5, %v656_v38, %v2122_v47  ;;  %v674_v32 = vsel %vm668_vm5, %v657_v48, %v2123_v24  ;;  %v2126_v35 = vpop.permute.xlu1 %2125  ;;  %1969 = vmatprep.subr.bf16.mxu0 %v2206_v21 }
  0xa5   : > { %v2707_v33 = vpack.c.bf16 %v674_v32, %v673_v29  ;;  %v2131_v39 = vpop.permute.xlu0 %2130  ;;  %v2128_v0 = vunpack.i.h.bf16 %v2126_v35  ;;  %v2127_v40 = vunpack.i.l.bf16 %v2126_v35  ;;  %v733_v35 = vsel %vm457_vm2, 0.0, %v728_v31 }
  0xa6   : > { %v2133_v41 = vunpack.i.h.bf16 %v2131_v39  ;;  %v2132_v44 = vunpack.i.l.bf16 %v2131_v39 }
  0xa7   : > { %1920 = vmatmul.mubr.msk.bf16.vlgmr.msra.gmra.mrb[0].mxu1 %vm2678_vm7, %v2707_v33  ;;  %1955 = vmatprep.mubr.msk.bf16.mxu0 %vm2678_vm7, %v2707_v33  ;;  %v675_v43 = vsel %vm668_vm5, %v658_v20, %v2127_v40  ;;  %v676_v17 = vsel %vm668_vm5, %v659_v7, %v2128_v0 }
  0xa8   : > { %1970 = vmatpush3.bf16.msra.mxu0 %v2206_v21  ;;  %v2726_v49 = vpack.c.bf16 %v676_v17, %v675_v43  ;;  %v661_v51 = vsel %vm651_vm4, %v2633_v25, %v2133_v41  ;;  %v660_v52 = vsel %vm651_vm4, %v502_v36, %v2132_v44  ;;  %v2136_v55 = vpop.permute.xlu1 %2135  ;;  %2007 = vmatpush3.bf16.msra.mxu1 %v2493_v23  ;;  %v503_v23 = vsel %vm457_vm2, 0.0, %v473_v22  ;;  %v2212_v43 = vld [vmem:[%s3014_s3 + $0xb8] sm:$0xff]  }
  0xa9   : > { %v2141_v59 = vpop.permute.xlu0 %2140  ;;  %1971 = vmatprep.subr.bf16.mxu0 %v2207_v50  ;;  %2000 = vmatprep.subr.bf16.mxu1 %v2206_v21  ;;  %v2138_v2 = vunpack.i.h.bf16 %v2136_v55  ;;  %v2137_v42 = vunpack.i.l.bf16 %v2136_v55  ;;  %v1073_v17 = vsel %vm457_vm2, 0.0, %v1068_v54 }
  0xaa   : > { %v2143_v63 = vunpack.i.h.bf16 %v2141_v59  ;;  %v2142_v53 = vunpack.i.l.bf16 %v2141_v59  ;;  %1923 = vmatprep.mubr.msk.bf16.mxu1 %vm2678_vm7, %v2726_v49  ;;  %1956 = vmatmul.mubr.msk.bf16.gmra.mrb[4].mxu0 %vm2678_vm7, %v2726_v49 }
  0xab   : > { %v663_v12 = vsel %vm651_vm4, %v2641_v58, %v2138_v2  ;;  %v662_v13 = vsel %vm651_vm4, %v503_v23, %v2137_v42 }
  0xac   : > { %v677_v25 = vsel %vm668_vm5, %v660_v52, %v2142_v53  ;;  %v678_v3 = vsel %vm668_vm5, %v661_v51, %v2143_v63  ;;  %1972 = vmatpush3.bf16.msra.mxu0 %v2207_v50  ;;  %v2146_v5 = vpop.permute.xlu1 %2145  ;;  %2008 = vmatpush3.bf16.msra.mxu1 %v2206_v21 }
  0xad   : > { %v2746_v4 = vpack.c.bf16 %v678_v3, %v677_v25  ;;  %v2151_v8 = vpop.permute.xlu0 %2150  ;;  %1973 = vmatprep.subr.bf16.mxu0 %v2208_v60  ;;  %v2148_v22 = vunpack.i.h.bf16 %v2146_v5  ;;  %v2147_v9 = vunpack.i.l.bf16 %v2146_v5  ;;  %2001 = vmatprep.subr.bf16.mxu1 %v2207_v50 }
  0xae   : > { %v2153_v10 = vunpack.i.h.bf16 %v2151_v8  ;;  %v2152_v11 = vunpack.i.l.bf16 %v2151_v8 }
  0xaf   : > { %1924 = vmatmul.mubr.msk.bf16.gmra.mrb[4].mxu1 %vm2678_vm7, %v2746_v4  ;;  %1959 = vmatprep.mubr.msk.bf16.mxu0 %vm2678_vm7, %v2746_v4  ;;  %v679_v61 = vsel %vm668_vm5, %v662_v13, %v2147_v9  ;;  %v680_v56 = vsel %vm668_vm5, %v663_v12, %v2148_v22 }
  0xb0   : > { %1974 = vmatpush3.bf16.msra.mxu0 %v2208_v60  ;;  %v2765_v48 = vpack.c.bf16 %v680_v56, %v679_v61  ;;  %v665_v58 = vsel %vm651_vm4, %v2648_v30, %v2153_v10  ;;  %v664_v38 = vsel %vm651_vm4, %v504_v6, %v2152_v11  ;;  %v2156_v15 = vpop.permute.xlu1 %2155  ;;  %2009 = vmatpush3.bf16.msra.mxu1 %v2207_v50  ;;  %v505_v30 = vsel %vm457_vm2, 0.0, %v479_v28 }
  0xb1   : > { %v2161_v46 = vpop.permute.xlu0 %2160  ;;  %1975 = vmatprep.subr.bf16.mxu0 %v2209_v57  ;;  %2002 = vmatprep.subr.bf16.mxu1 %v2208_v60  ;;  %v2158_v47 = vunpack.i.h.bf16 %v2156_v15  ;;  %v2157_v26 = vunpack.i.l.bf16 %v2156_v15 }
  0xb2   : > { %v2163_v21 = vunpack.i.h.bf16 %v2161_v46  ;;  %v2162_v24 = vunpack.i.l.bf16 %v2161_v46  ;;  %1927 = vmatprep.mubr.msk.bf16.mxu1 %vm2678_vm7, %v2765_v48  ;;  %1960 = vmatmul.mubr.msk.bf16.gmra.mrb[8].mxu0 %vm2678_vm7, %v2765_v48 }
  0xb3   : > { %v667_v40 = vsel %vm651_vm4, %v2654_v62, %v2158_v47  ;;  %v666_v41 = vsel %vm651_vm4, %v505_v30, %v2157_v26 }
  0xb4   : > { %v681_v27 = vsel %vm668_vm5, %v664_v38, %v2162_v24  ;;  %v682_v45 = vsel %vm668_vm5, %v665_v58, %v2163_v21  ;;  %1976 = vmatpush3.bf16.msra.mxu0 %v2209_v57  ;;  %v2166_v32 = vpop.permute.xlu1 %2165  ;;  %2010 = vmatpush3.bf16.msra.mxu1 %v2208_v60 }
  0xb5   : > { %v1680_v29 = vpack.c.bf16 %v682_v45, %v681_v27  ;;  %1977 = vmatprep.subr.bf16.mxu0 %v2210_v18  ;;  %v2171_v36 = vpop.permute.xlu0 %2170  ;;  %v2168_v39 = vunpack.i.h.bf16 %v2166_v32  ;;  %v2167_v28 = vunpack.i.l.bf16 %v2166_v32  ;;  %2003 = vmatprep.subr.bf16.mxu1 %v2209_v57 }
  0xb6   : > { %v2173_v50 = vunpack.i.h.bf16 %v2171_v36  ;;  %v2172_v0 = vunpack.i.l.bf16 %v2171_v36 }
  0xb7   : > { %1928 = vmatmul.mubr.msk.bf16.gmra.mrb[8].mxu1 %vm2678_vm7, %v1680_v29  ;;  %1963 = vmatprep.mubr.msk.bf16.mxu0 %vm2678_vm7, %v1680_v29  ;;  %v683_v37 = vsel %vm668_vm5, %v666_v41, %v2167_v28  ;;  %v684_v31 = vsel %vm668_vm5, %v667_v40, %v2168_v39 }
  0xb8   : > { %1978 = vmatpush3.bf16.msra.mxu0 %v2210_v18  ;;  %v1683_v44 = vpack.c.bf16 %v684_v31, %v683_v37  ;;  %v753_v7 = vsel %vm651_vm4, %v2661_v19, %v2173_v50  ;;  %v752_v20 = vsel %vm651_vm4, %v733_v35, %v2172_v0  ;;  %2011 = vmatpush3.bf16.msra.mxu1 %v2209_v57  ;;  %v2176_v62 = vpop.permute.xlu1 %2175 }
  0xb9   : > { %1979 = vmatprep.subr.bf16.mxu0 %v2211_v14  ;;  %v2181_v51 = vpop.permute.xlu0 %2180  ;;  %v2178_v52 = vunpack.i.h.bf16 %v2176_v62  ;;  %v2177_v55 = vunpack.i.l.bf16 %v2176_v62  ;;  %2004 = vmatprep.subr.bf16.mxu1 %v2210_v18 }
  0xba   : > { %v2183_v59 = vunpack.i.h.bf16 %v2181_v51  ;;  %v2182_v60 = vunpack.i.l.bf16 %v2181_v51  ;;  %1931 = vmatprep.mubr.msk.bf16.mxu1 %vm2678_vm7, %v1683_v44  ;;  %1964 = vmatmul.mubr.msk.bf16.gmra.mrb[12].mxu0 %vm2678_vm7, %v1683_v44 }
  0xbb   : > { %v755_v19 = vsel %vm668_vm5, %v753_v7, %v2178_v52  ;;  %v754_v63 = vsel %vm668_vm5, %v752_v20, %v2177_v55  ;;  %1983 = vmatprep.mubr.msk.bf16.mxu0 %vm2678_vm7, %v2707_v33 }
  0xbc   : > { %1980 = vmatpush3.bf16.msra.mxu0 %v2211_v14  ;;  %v1686_v1 = vpack.c.bf16 %v755_v19, %v754_v63  ;;  %2012 = vmatpush3.bf16.msra.mxu1 %v2210_v18  ;;  %v1093_v54 = vsel %vm651_vm4, %v2666_v34, %v2183_v59  ;;  %v1092_v53 = vsel %vm651_vm4, %v1073_v17, %v2182_v60  ;;  %v2186_v2 = vpop.permute.xlu1 %2185 }
  0xbd   : > { %1981 = vmatprep.subr.bf16.mxu0 %v2212_v43  ;;  %2005 = vmatprep.subr.bf16.mxu1 %v2211_v14  ;;  %v2188_v42 = vunpack.i.h.bf16 %v2186_v2  ;;  %v2187_v23 = vunpack.i.l.bf16 %v2186_v2 }
  0xbf   : > { %1932 = vmatmul.mubr.msk.bf16.gmra.mrb[12].mxu1 %vm2678_vm7, %v1686_v1  ;;  %v1095_v33 = vsel %vm668_vm5, %v1093_v54, %v2188_v42  ;;  %v1094_v25 = vsel %vm668_vm5, %v1092_v53, %v2187_v23 }
  0xc0   : > { %1982 = vmatpush3.bf16.msra.mxu0 %v2212_v43  ;;  %1991 = vmatprep.mubr.msk.bf16.mxu1 %vm2678_vm7, %v1680_v29  ;;  %v1766_v3 = vpack.c.bf16 %v1095_v33, %v1094_v25 }
  0xc1   : > { %2013 = vmatpush3.bf16.msra.mxu1 %v2211_v14  ;;  %v2860_v14 = vld [vmem:[%s3015_s4] ss:$0 sm:$0xff] }
  0xc2   : > { %2006 = vmatprep.subr.bf16.mxu1 %v2212_v43 }
  0xc3   : > { %1984 = vmatmul.mubr.msk.bf16.vlgmr.msra.gmra.mrb[0].mxu0 %vm2678_vm7, %v2726_v49 }
  0xc4   : > { %1987 = vmatprep.mubr.msk.bf16.mxu0 %vm2678_vm7, %v2746_v4 }
  0xc5   : > { %2014 = vmatpush3.bf16.msra.mxu1 %v2212_v43 }
  0xc8   : > { %1992 = vmatmul.mubr.msk.bf16.vlgmr.msra.gmra.mrb[16].mxu1 %vm2678_vm7, %v1683_v44 }
  0xc9   : > { %1995 = vmatprep.mubr.msk.bf16.mxu1 %vm2678_vm7, %v1686_v1 }
  0xcb   : > { %1988 = vmatmul.mubr.msk.bf16.gmra.mrb[4].mxu0 %vm2678_vm7, %v2765_v48 }
  0xd0   : > { %1996 = vmatmul.mubr.msk.bf16.gmra.mrb[20].mxu1 %vm2678_vm7, %v1766_v3 }
 0x17a   : > { %v1921_v34 = vpop.f32.mrb[0].mxu1 }
 0x17b   : > { %v858_v49 = vpop.f32.mrb[1].mxu1 }
 0x17c   : > { %v1922_v5 = vpop.f32.mrb[2].mxu1 }
 0x17d   : > { %v861_v6 = vpop.f32.mrb[3].mxu1 }
 0x182   : > { %v2841_v8 = vpop.f32.mrb[4].mxu1 }
 0x183   : > { %v2843_v4 = vpop.f32.mrb[5].mxu1 }
 0x184   : > { %v2845_v57 = vpop.f32.mrb[6].mxu1 }
 0x185   : > { %v2847_v22 = vpop.f32.mrb[7].mxu1  ;;  %v1961_v9 = vpop.f32.mrb[8].mxu0 }
 0x186   : > { %v1035_v10 = vpop.f32.mrb[9].mxu0 }
 0x187   : > { %v1962_v11 = vpop.f32.mrb[10].mxu0 }
 0x188   : > { %v1038_v12 = vpop.f32.mrb[11].mxu0 }
 0x18a   : > { %v1929_v13 = vpop.f32.mrb[8].mxu1 }
 0x18b   : > { %v1044_v61 = vadd.f32 %v1961_v9, %v1929_v13  ;;  %v890_v16 = vpop.f32.mrb[9].mxu1 }
 0x18c   : > { %v1036_v56 = vadd.f32 %v1035_v10, %v890_v16  ;;  %v1930_v48 = vpop.f32.mrb[10].mxu1 }
 0x18d   : > { %v1047_v58 = vadd.f32 %v1962_v11, %v1930_v48  ;;  %v893_v38 = vpop.f32.mrb[11].mxu1  ;;  %v1965_v46 = vpop.f32.mrb[12].mxu0 }
 0x18e   : > { %v1039_v15 = vadd.f32 %v1038_v12, %v893_v38  ;;  %v1051_v18 = vpop.f32.mrb[13].mxu0 }
 0x18f   : > { %v1966_v21 = vpop.f32.mrb[14].mxu0 }
 0x190   : > { %v1054_v24 = vpop.f32.mrb[15].mxu0 }
 0x192   : > { %v1933_v47 = vpop.f32.mrb[12].mxu1 }
 0x193   : > { %v2849_v26 = vadd.f32 %v1965_v46, %v1933_v47  ;;  %v906_v30 = vpop.f32.mrb[13].mxu1 }
 0x194   : > { %v2851_v27 = vadd.f32 %v1051_v18, %v906_v30  ;;  %v1934_v45 = vpop.f32.mrb[14].mxu1 }
 0x195   : > { %v2853_v29 = vadd.f32 %v1966_v21, %v1934_v45  ;;  %v909_v32 = vpop.f32.mrb[15].mxu1 }
 0x196   : > { %v2855_v35 = vadd.f32 %v1054_v24, %v909_v32  ;;  %v1985_v36 = vpop.f32.mrb[0].mxu0 }
 0x197   : > { %v2015_v39 = vadd.f32 %v1985_v36, %v1921_v34  ;;  %v1198_v28 = vpop.f32.mrb[1].mxu0 }
 0x198   : > { %v2016_v50 = vadd.f32 %v1198_v28, %v858_v49  ;;  %v1986_v0 = vpop.f32.mrb[2].mxu0 }
 0x199   : > { %v1286_v40 = vadd.f32 %v2015_v39, %v2860_v14  ;;  %v2017_v41 = vadd.f32 %v1986_v0, %v1922_v5  ;;  %v1201_v37 = vpop.f32.mrb[3].mxu0 }
 0x19a   : > { %v1284_v31 = vadd.f32 %v2016_v50, %v2860_v14  ;;  %v2018_v44 = vadd.f32 %v1201_v37, %v861_v6 }
 0x19b   : > { %v1794_v7 = vpack.c.bf16 %v1286_v40, %v1286_v40  ;;  %v1420_v20 = vmul.f32 %v1286_v40, %v1286_v40  ;;  %v1287_v62 = vadd.f32 %v2017_v41, %v2860_v14  ;;  %v1993_v43 = vpop.f32.mrb[16].mxu1  ;;  %v1384_v59 = vsel %vm651_vm4, %v1286_v40, 0.0 }
 0x19c   : > { %v1792_v17 = vpack.c.bf16 %v1284_v31, %v1284_v31  ;;  %v1418_v51 = vmul.f32 %v1284_v31, %v1284_v31  ;;  %v1285_v52 = vadd.f32 %v2018_v44, %v2860_v14  ;;  %v1230_v55 = vpop.f32.mrb[17].mxu1  ;;  %v1381_v60 = vsel %vm651_vm4, %v1284_v31, 0.0 }
 0x19d   : > { %1367 = vst.msk [vmem:[%s2867_s9 + $0x8] sm:$0xf] %vm1364_vm8, %v1794_v7  ;;  %v1795_v19 = vpack.c.bf16 %v1287_v62, %v1287_v62  ;;  %v1994_v63 = vpop.f32.mrb[18].mxu1  ;;  %v1437_v1 = vsel %vm651_vm4, %v1420_v20, 0.0  ;;  %v1271_v3 = vadd.f32 %v1993_v43, %v1044_v61  ;;  %v1269_v34 = vadd.f32 %v1230_v55, %v1036_v56 }
 0x19e   : > { %1365 = vst.msk [vmem:[%s2867_s9] sm:$0xf] %vm1364_vm8, %v1792_v17  ;;  %v1793_v54 = vpack.c.bf16 %v1285_v52, %v1285_v52  ;;  %v1382_v53 = vsel %vm651_vm4, %v1285_v52, 0.0  ;;  %v1419_v2 = vmul.f32 %v1285_v52, %v1285_v52  ;;  %v1989_v42 = vpop.f32.mrb[4].mxu0  ;;  %v1233_v23 = vpop.f32.mrb[19].mxu1  ;;  %v1434_v33 = vsel %vm651_vm4, %v1418_v51, 0.0 }
 0x19f   : > { %1368 = vst.msk [vmem:[%s2867_s9 + $0xc] sm:$0xf] %vm1364_vm8, %v1795_v19  ;;  %v1383_v25 = vadd.f32 %v1382_v53, %v1381_v60  ;;  %v1214_v49 = vpop.f32.mrb[5].mxu0  ;;  %v1272_v6 = vadd.f32 %v1994_v63, %v1047_v58  ;;  %v2019_v9 = vadd.f32 %v1989_v42, %v2841_v8  ;;  %v1270_v10 = vadd.f32 %v1233_v23, %v1039_v15 }
 0x1a0   : > { %1366 = vst.msk [vmem:[%s2867_s9 + $0x4] sm:$0xf] %vm1364_vm8, %v1793_v54  ;;  %v1435_v5 = vsel %vm651_vm4, %v1419_v2, 0.0  ;;  %v1990_v11 = vpop.f32.mrb[6].mxu0  ;;  %v2888_v16 = vadd.f32 %v2860_v14, %v1271_v3  ;;  %v2891_v48 = vadd.f32 %v2860_v14, %v1269_v34  ;;  %v2020_v38 = vadd.f32 %v1214_v49, %v2843_v4 }
 0x1a1   : > { %v1385_v12 = vadd.f32 %v1384_v59, %v1383_v25  ;;  %v1436_v13 = vadd.f32 %v1435_v5, %v1434_v33  ;;  %v1217_v61 = vpop.f32.mrb[7].mxu0  ;;  %v2894_v56 = vadd.f32 %v2860_v14, %v1272_v6  ;;  %v1290_v58 = vadd.f32 %v2019_v9, %v2860_v14 }
 0x1a2   : > { %v2898_v8 = vadd.f32 %v2860_v14, %v1270_v10  ;;  %v1421_v15 = vmul.f32 %v1287_v62, %v1287_v62  ;;  %v1802_v18 = vpack.c.bf16 %v2888_v16, %v2888_v16  ;;  %v1800_v24 = vpack.c.bf16 %v2891_v48, %v2891_v48 }
 0x1a3   : > { %v1438_v46 = vadd.f32 %v1437_v1, %v1436_v13  ;;  %v1997_v21 = vpop.f32.mrb[20].mxu1  ;;  %v1803_v47 = vpack.c.bf16 %v2894_v56, %v2894_v56  ;;  %v1798_v45 = vpack.c.bf16 %v1290_v58, %v1290_v58  ;;  %v1386_v39 = vsel %vm651_vm4, %v1287_v62, 0.0 }
 0x1a4   : > { %v1246_v30 = vpop.f32.mrb[21].mxu1  ;;  %1375 = vst.msk [vmem:[%s2867_s9 + $0x28] sm:$0xf] %vm1364_vm8, %v1802_v18  ;;  %1373 = vst.msk [vmem:[%s2867_s9 + $0x20] sm:$0xf] %vm1364_vm8, %v1800_v24  ;;  %v1801_v4 = vpack.c.bf16 %v2898_v8, %v2898_v8  ;;  %v1439_v28 = vsel %vm651_vm4, %v1421_v15, 0.0  ;;  %v1288_v50 = vadd.f32 %v2020_v38, %v2860_v14  ;;  %v1387_v0 = vadd.f32 %v1386_v39, %v1385_v12 }
 0x1a5   : > { %v1998_v32 = vpop.f32.mrb[22].mxu1  ;;  %1376 = vst.msk [vmem:[%s2867_s9 + $0x2c] sm:$0xf] %vm1364_vm8, %v1803_v47  ;;  %1371 = vst.msk [vmem:[%s2867_s9 + $0x18] sm:$0xf] %vm1364_vm8, %v1798_v45  ;;  %v1440_v40 = vadd.f32 %v1439_v28, %v1438_v46  ;;  %v2021_v41 = vadd.f32 %v1990_v11, %v2845_v57  ;;  %v2022_v62 = vadd.f32 %v1217_v61, %v2847_v22  ;;  %v1392_v42 = vsel %vm651_vm4, %v1290_v58, 0.0 }
 0x1a6   : > { %v1249_v36 = vpop.f32.mrb[23].mxu1  ;;  %1374 = vst.msk [vmem:[%s2867_s9 + $0x24] sm:$0xf] %vm1364_vm8, %v1801_v4  ;;  %v1796_v37 = vpack.c.bf16 %v1288_v50, %v1288_v50  ;;  %v1388_v31 = vsel %vm651_vm4, %v1288_v50, 0.0  ;;  %v1422_v44 = vmul.f32 %v1288_v50, %v1288_v50  ;;  %v1275_v43 = vadd.f32 %v1997_v21, %v2849_v26 }
 0x1a7   : > { %v1389_v7 = vadd.f32 %v1388_v31, %v1387_v0  ;;  %v1291_v20 = vadd.f32 %v2021_v41, %v2860_v14  ;;  %v1273_v51 = vadd.f32 %v1246_v30, %v2851_v27  ;;  %v1276_v57 = vadd.f32 %v1998_v32, %v2853_v29 }
 0x1a8   : > { %1369 = vst.msk [vmem:[%s2867_s9 + $0x10] sm:$0xf] %vm1364_vm8, %v1796_v37  ;;  %v1441_v17 = vsel %vm651_vm4, %v1422_v44, 0.0  ;;  %v1274_v52 = vadd.f32 %v1249_v36, %v2855_v35  ;;  %v1289_v60 = vadd.f32 %v2022_v62, %v2860_v14  ;;  %v1298_v19 = vadd.f32 %v2860_v14, %v1275_v43 }
 0x1a9   : > { %v1442_v55 = vadd.f32 %v1441_v17, %v1440_v40  ;;  %v1799_v59 = vpack.c.bf16 %v1291_v20, %v1291_v20  ;;  %v1296_v22 = vadd.f32 %v2860_v14, %v1273_v51  ;;  %v2937_v26 = vadd.f32 %v2860_v14, %v1276_v57 }
 0x1aa   : > { %v1424_v63 = vmul.f32 %v1290_v58, %v1290_v58  ;;  %v1297_v27 = vadd.f32 %v2860_v14, %v1274_v52  ;;  %v1797_v29 = vpack.c.bf16 %v1289_v60, %v1289_v60  ;;  %v1390_v35 = vsel %vm651_vm4, %v1289_v60, 0.0 }
 0x1ab   : > { %1372 = vst.msk [vmem:[%s2867_s9 + $0x1c] sm:$0xf] %vm1364_vm8, %v1799_v59  ;;  %v1423_v1 = vmul.f32 %v1289_v60, %v1289_v60  ;;  %v1806_v54 = vpack.c.bf16 %v1298_v19, %v1298_v19  ;;  %v1391_v53 = vadd.f32 %v1390_v35, %v1389_v7  ;;  %v1804_v2 = vpack.c.bf16 %v1296_v22, %v1296_v22 }
 0x1ac   : > { %v1425_v23 = vmul.f32 %v1291_v20, %v1291_v20  ;;  %1370 = vst.msk [vmem:[%s2867_s9 + $0x14] sm:$0xf] %vm1364_vm8, %v1797_v29  ;;  %v1807_v14 = vpack.c.bf16 %v2937_v26, %v2937_v26  ;;  %v1426_v34 = vmul.f32 %v2891_v48, %v2891_v48  ;;  %v1445_v49 = vsel %vm651_vm4, %v1424_v63, 0.0 }
 0x1ad   : > { %v1443_v33 = vsel %vm651_vm4, %v1423_v1, 0.0  ;;  %1379 = vst.msk [vmem:[%s2867_s9 + $0x38] sm:$0xf] %vm1364_vm8, %v1806_v54  ;;  %v1393_v25 = vadd.f32 %v1392_v42, %v1391_v53  ;;  %1377 = vst.msk [vmem:[%s2867_s9 + $0x30] sm:$0xf] %vm1364_vm8, %v1804_v2  ;;  %v1394_v5 = vsel %vm651_vm4, %v1291_v20, 0.0  ;;  %v1805_v6 = vpack.c.bf16 %v1297_v27, %v1297_v27 }
 0x1ae   : > { %v1444_v3 = vadd.f32 %v1443_v33, %v1442_v55  ;;  %1380 = vst.msk [vmem:[%s2867_s9 + $0x3c] sm:$0xf] %vm1364_vm8, %v1807_v14  ;;  %v1396_v11 = vsel %vm651_vm4, %v2891_v48, 0.0  ;;  %v1427_v12 = vmul.f32 %v2898_v8, %v2898_v8  ;;  %v1447_v13 = vsel %vm651_vm4, %v1425_v23, 0.0 }
 0x1af   : > { %v1395_v9 = vadd.f32 %v1394_v5, %v1393_v25  ;;  %1378 = vst.msk [vmem:[%s2867_s9 + $0x34] sm:$0xf] %vm1364_vm8, %v1805_v6  ;;  %v1428_v38 = vmul.f32 %v2888_v16, %v2888_v16  ;;  %v1449_v15 = vsel %vm651_vm4, %v1426_v34, 0.0  ;;  %v1398_v46 = vsel %vm651_vm4, %v2898_v8, 0.0 }
 0x1b0   : > { %v1446_v10 = vadd.f32 %v1445_v49, %v1444_v3  ;;  %v1400_v48 = vsel %vm651_vm4, %v2888_v16, 0.0  ;;  %v1429_v24 = vmul.f32 %v2894_v56, %v2894_v56  ;;  %v1451_v47 = vsel %vm651_vm4, %v1427_v12, 0.0 }
 0x1b1   : > { %v1397_v61 = vadd.f32 %v1396_v11, %v1395_v9  ;;  %v1453_v32 = vsel %vm651_vm4, %v1428_v38, 0.0  ;;  %v1402_v4 = vsel %vm651_vm4, %v2894_v56, 0.0  ;;  %v1430_v36 = vmul.f32 %v1296_v22, %v1296_v22 }
 0x1b2   : > { %v1448_v58 = vadd.f32 %v1447_v13, %v1446_v10  ;;  %v1455_v28 = vsel %vm651_vm4, %v1429_v24, 0.0  ;;  %v1404_v50 = vsel %vm651_vm4, %v1296_v22, 0.0  ;;  %v1431_v16 = vmul.f32 %v1297_v27, %v1297_v27 }
 0x1b3   : > { %v1399_v21 = vadd.f32 %v1398_v46, %v1397_v61  ;;  %v1432_v41 = vmul.f32 %v1298_v19, %v1298_v19  ;;  %v1457_v37 = vsel %vm651_vm4, %v1430_v36, 0.0  ;;  %v1406_v31 = vsel %vm651_vm4, %v1297_v27, 0.0 }
 0x1b4   : > { %v1450_v18 = vadd.f32 %v1449_v15, %v1448_v58  ;;  %v1408_v20 = vsel %vm651_vm4, %v1298_v19, 0.0  ;;  %v1433_v56 = vmul.f32 %v2937_v26, %v2937_v26  ;;  %v1459_v62 = vsel %vm651_vm4, %v1431_v16, 0.0 }
 0x1b5   : > { %v1401_v30 = vadd.f32 %v1400_v48, %v1399_v21  ;;  %v1461_v51 = vsel %vm651_vm4, %v1432_v41, 0.0  ;;  %v1410_v57 = vsel %vm651_vm4, %v2937_v26, 0.0 }
 0x1b6   : > { %v1452_v45 = vadd.f32 %v1451_v47, %v1450_v18  ;;  %v1463_v59 = vsel %vm651_vm4, %v1433_v56, 0.0 }
 0x1b7   : > { %v1403_v39 = vadd.f32 %v1402_v4, %v1401_v30 }
 0x1b8   : > { %v1454_v8 = vadd.f32 %v1453_v32, %v1452_v45 }
 0x1b9   : > { %v1405_v0 = vadd.f32 %v1404_v50, %v1403_v39 }
 0x1ba   : > { %v1456_v40 = vadd.f32 %v1455_v28, %v1454_v8 }
 0x1bb   : > { %v1407_v7 = vadd.f32 %v1406_v31, %v1405_v0 }
 0x1bc   : > { %v1458_v44 = vadd.f32 %v1457_v37, %v1456_v40 }
 0x1bd   : > { %v1409_v43 = vadd.f32 %v1408_v20, %v1407_v7 }
 0x1be   : > { %v1460_v17 = vadd.f32 %v1459_v62, %v1458_v44 }
 0x1bf   : > { %v1411_v52 = vadd.f32 %v1410_v57, %v1409_v43 }
 0x1c0   : > { %v1462_v55 = vadd.f32 %v1461_v51, %v1460_v17 }
 0x1c1   : > { %v1412_v60 = vrot.slane %v1411_v52, 4 }
 0x1c2   : > { %v1464_v22 = vadd.f32 %v1463_v59, %v1462_v55 }
 0x1c3   : > { %v1413_v19 = vadd.f32 %v1412_v60, %v1411_v52 }
 0x1c4   : > { %v1465_v63 = vrot.slane %v1464_v22, 4 }
 0x1c5   : > { %v1414_v27 = vrot.slane %v1413_v19, 2 }
 0x1c6   : > { %v1466_v29 = vadd.f32 %v1465_v63, %v1464_v22 }
 0x1c7   : > { %v1415_v35 = vadd.f32 %v1414_v27, %v1413_v19 }
 0x1c8   : > { %v1467_v1 = vrot.slane %v1466_v29, 2 }
 0x1c9   : > { %v1416_v54 = vrot.slane %v1415_v35, 1 }
 0x1ca   : > { %v1468_v53 = vadd.f32 %v1467_v1, %v1466_v29 }
 0x1cb   : > { %v1417_v26 = vadd.f32 %v1416_v54, %v1415_v35 }
 0x1cc   : > { %v1469_v2 = vrot.slane %v1468_v53, 1 }
 0x1ce   : > { %v1470_v42 = vadd.f32 %v1469_v2, %v1468_v53 }
 0x1d0   : > { %v1471_v23 = vsel %vm457_vm2, %v1417_v26, %v1470_v42 }
 0x1d1   : > { %1473 = vst.msk [vmem:[%s297_s11] sm:$0x3] %vm1472_vm9, %v1471_v23 }
 0x1d2 PF: > { %s17_s25 = sadd.s32 1, %s2251_s25   ;;  %s3023_s21 = smov %s2243_s23 }
 0x1d3   : > { %p14_p11 = scmp.ge.s32.totalorder %s17_s25, 6   ;;  %s3024_s22 = smov %s2247_s24 }
 0x1d4   : > { %s3025_s23 = smov %s3028_s26  ;;  %s3026_s24 = smov %s3032_s27 }
 0x1d5   :  { %16 = sbr.rel (!%p14_p11) target bundleno = 3 (0x3), region = 87 }

</bundles_post_ra>
